<compile_context>
chip_gen: v5e
topology: v5e:2x2
jax: 0.10.0
libtpu: 0.0.40
codegen_flags: <defaults>
</compile_context>

<pallas_src>
import functools

import jax
import jax.numpy as jnp
from jax import lax
from jax.experimental import pallas as pl
from jax.experimental.pallas import tpu as pltpu

F32 = jnp.float32
BF16 = jnp.bfloat16
_EPS_MVN = 1e-5        # mean_variance_norm eps (SANet convention)
_EPS_CHOL = 2e-5       # Whiten eps


# --------------------------------------------------------------------------
# Small helpers: tile picking + compiler params with explicit VMEM budget.
# --------------------------------------------------------------------------
def _pick_tile(n, preferred):
    """Largest preferred tile that divides n; prefer choices that give >= 2
    tiles so the reduction / pipeline path is actually exercised. Falls back
    to n (monolithic) when nothing divides."""
    divs = [t for t in preferred if t <= n and n % t == 0]
    if not divs:
        return n
    multi = [t for t in divs if n // t >= 2]
    return max(multi) if multi else max(divs)


def _cp(semantics, block_bytes):
    # Explicit VMEM budget sized to the chosen tiles (x2 for double buffering
    # + headroom) instead of the scoped default (16 MiB v5e / 32 MiB v6e,v7x).
    # Clamped to 64 MiB so it never exceeds v7x physical VMEM.
    limit = int(min(max(2 * block_bytes + (4 << 20), 16 << 20), 64 << 20))
    return pltpu.CompilerParams(dimension_semantics=semantics,
                                vmem_limit_bytes=limit)


# --------------------------------------------------------------------------
# Kernel 1: per-batch covariance, tiled over HW (reduction axis last).
#   cov = (sum_k x x^T - n * mean mean^T) / (n - 1)
# --------------------------------------------------------------------------
def _cov_kernel(x_ref, cov_ref, s1_ref, s2_ref, *, hw_total):
    k = pl.program_id(1)

    @pl.when(k == 0)
    def _():
        s1_ref[...] = jnp.zeros_like(s1_ref)
        s2_ref[...] = jnp.zeros_like(s2_ref)

    x = x_ref[0]                                              # (C, hw_blk) f32
    s1_ref[...] += jnp.sum(x, axis=-1, keepdims=True)
    # x @ x^T with no explicit transpose: contract the HW axis of both.
    s2_ref[...] += lax.dot_general(x, x, (((1,), (1,)), ((), ())),
                                   preferred_element_type=jnp.float32)

    @pl.when(k == pl.num_programs(1) - 1)
    def _():
        n = float(hw_total)
        mean = s1_ref[...] * (1.0 / n)                        # (C, 1)
        mm = lax.dot_general(mean, mean, (((1,), (1,)), ((), ())),
                             preferred_element_type=jnp.float32)
        cov_ref[0] = (s2_ref[...] - n * mm) * (1.0 / max(hw_total - 1, 1))


def batched_cov(x, hw_blk=None):
    B, C, HW = x.shape
    if hw_blk is None:
        # 1024-2048 at production HW; falls back to smaller / HW otherwise.
        hw_blk = _pick_tile(HW, (2048, 1024, 512, 256, 128))
    nk = HW // hw_blk
    block_bytes = (C * hw_blk + 2 * C * C + C) * 4
    return pl.pallas_call(
        functools.partial(_cov_kernel, hw_total=HW),
        out_shape=jax.ShapeDtypeStruct((B, C, C), F32),
        grid=(B, nk),
        in_specs=[pl.BlockSpec((1, C, hw_blk), lambda b, k: (b, 0, k))],
        out_specs=pl.BlockSpec((1, C, C), lambda b, k: (b, 0, 0)),
        scratch_shapes=[pltpu.VMEM((C, 1), F32),
                        pltpu.VMEM((C, C), F32)],
        compiler_params=_cp(("parallel", "arbitrary"), block_bytes),
    )(x)


# --------------------------------------------------------------------------
# Kernel 2: fused whitening + mean_variance_norm + f/g/h 1x1 convs.
# One grid step per batch item; f/g/h emitted in bf16 (MXU-only consumers).
# --------------------------------------------------------------------------
def _proj_kernel(invl_ref, x_ref, wfg_ref, bfg_ref, wh_ref, bh_ref,
                 f_ref, g_ref, h_ref):
    x = x_ref[0]                                              # (C, HW) f32
    C, n = x.shape

    # Whitening: inv_L @ (x - mean).  Kept f32 to track the reference.
    xc = x - jnp.mean(x, axis=-1, keepdims=True)
    wx = jnp.dot(invl_ref[0], xc, preferred_element_type=jnp.float32)

    # mean_variance_norm: unbiased variance, eps before sqrt, EUP rsqrt.
    wc = wx - jnp.mean(wx, axis=-1, keepdims=True)
    var = jnp.sum(wc * wc, axis=-1, keepdims=True) * (1.0 / max(n - 1, 1))
    wn = wc * lax.rsqrt(var + _EPS_MVN)

    # f and g fused into one stacked (2C, C) matmul: bf16 operands, f32 acc.
    fg = jnp.dot(wfg_ref[...].astype(BF16), wn.astype(BF16),
                 preferred_element_type=jnp.float32) + bfg_ref[...]
    # h 1x1 conv on the raw content features: bf16 operands, f32 acc.
    h = jnp.dot(wh_ref[...].astype(BF16), x.astype(BF16),
                preferred_element_type=jnp.float32) + bh_ref[...]

    # NOTE: fg[:C] / fg[C:] are free (aligned) views only when C % 8 == 0;
    # otherwise the slices materialize (C, HW) VMEM copies (perf only).
    f_ref[0] = fg[:C].astype(BF16)
    g_ref[0] = fg[C:].astype(BF16)
    h_ref[0] = h.astype(BF16)


def fused_projections(inv_L, x, w_fg, b_fg, w_h, b_h):
    B, C, HW = x.shape
    C2 = w_fg.shape[0]
    block_bytes = ((C * C + C * HW + C2 * C + C2 + C * C + C) * 4
                   + 3 * C * HW * 2)
    out_sds = jax.ShapeDtypeStruct((B, C, HW), BF16)
    return pl.pallas_call(
        _proj_kernel,
        out_shape=(out_sds, out_sds, out_sds),
        grid=(B,),
        in_specs=[pl.BlockSpec((1, C, C), lambda b: (b, 0, 0)),   # inv_L
                  pl.BlockSpec((1, C, HW), lambda b: (b, 0, 0)),  # x
                  pl.BlockSpec((C2, C), lambda b: (0, 0)),        # W_fg (resident)
                  pl.BlockSpec((C2, 1), lambda b: (0, 0)),        # b_fg
                  pl.BlockSpec((C, C), lambda b: (0, 0)),         # W_h
                  pl.BlockSpec((C, 1), lambda b: (0, 0))],        # b_h
        out_specs=[pl.BlockSpec((1, C, HW), lambda b: (b, 0, 0))] * 3,
        compiler_params=_cp(("parallel",), block_bytes),
    )(inv_L, x, w_fg, b_fg, w_h, b_h)


# --------------------------------------------------------------------------
# Kernel 3: flash-tiled spatial attention + out 1x1 conv + residual.
# Grid (B, q-tiles, k-tiles); (HW, HW) energy/softmax never materialized.
# --------------------------------------------------------------------------
def _attn_out_kernel(f_ref, g_ref, h_ref, x_ref, wo_ref, bo_ref, o_ref,
                     m_sc, l_sc, acc_sc):
    k = pl.program_id(2)

    @pl.when(k == 0)
    def _():
        m_sc[...] = jnp.full(m_sc.shape, -jnp.inf, m_sc.dtype)
        l_sc[...] = jnp.zeros_like(l_sc)
        acc_sc[...] = jnp.zeros_like(acc_sc)

    f = f_ref[0]                                              # (C, tq) bf16
    g = g_ref[0]                                              # (C, tk) bf16
    h = h_ref[0]                                              # (C, tk) bf16

    # energy[q, k] = sum_c f[c, q] g[c, k]  -- contract channels, no .T,
    # bf16 MXU operands with f32 accumulation.
    s = lax.dot_general(f, g, (((0,), (0,)), ((), ())),
                        preferred_element_type=jnp.float32)   # (tq, tk) f32

    # Online softmax (math stays f32 on the VPU/EUP).
    m_new = jnp.maximum(m_sc[...], jnp.max(s, axis=-1, keepdims=True))
    alpha = jnp.exp(m_sc[...] - m_new)
    p = jnp.exp(s - m_new)
    l_sc[...] = alpha * l_sc[...] + jnp.sum(p, axis=-1, keepdims=True)
    # acc[q, c] += sum_k p[q, k] h[c, k]  (normalization folded in at the end)
    acc_sc[...] = alpha * acc_sc[...] + lax.dot_general(
        p.astype(BF16), h, (((1,), (1,)), ((), ())),
        preferred_element_type=jnp.float32)
    m_sc[...] = m_new

    @pl.when(k == pl.num_programs(2) - 1)
    def _():
        # Fold softmax normalization into a per-query rescale (EUP reciprocal).
        o_t = acc_sc[...] * pl.reciprocal(l_sc[...], approx=True)   # (tq, C)
        # out 1x1 conv + residual: out[c, q] = sum_c' Wo[c, c'] o_t[q, c'].
        o = lax.dot_general(wo_ref[...].astype(BF16), o_t.astype(BF16),
                            (((1,), (1,)), ((), ())),
                            preferred_element_type=jnp.float32)     # (C, tq)
        o_ref[0] = o + bo_ref[...] + x_ref[0]


def flash_attention_out(f, g, h, x, w_o, b_o, tq=None, tk=None):
    B, C, HW = x.shape
    if tq is None:
        # multiples of 256 keep v6e/v7x MXU full at production HW.
        tq = _pick_tile(HW, (512, 256, 128))
    if tk is None:
        tk = _pick_tile(HW, (1024, 512, 256, 128))
    nq, nk = HW // tq, HW // tk
    block_bytes = (2 * C * tq * 2 + 2 * C * tk * 2      # f,g,h bf16 blocks
                   + 2 * C * tq * 4                     # x block + output
                   + (C * C + C) * 4                    # resident weights
                   + (2 * tq + tq * C) * 4              # m/l/acc scratch
                   + 2 * tq * tk * 4)                   # s/p live tiles
    return pl.pallas_call(
        _attn_out_kernel,
        out_shape=jax.ShapeDtypeStruct((B, C, HW), F32),
        grid=(B, nq, nk),
        in_specs=[pl.BlockSpec((1, C, tq), lambda b, q, k: (b, 0, q)),   # f
                  pl.BlockSpec((1, C, tk), lambda b, q, k: (b, 0, k)),   # g
                  pl.BlockSpec((1, C, tk), lambda b, q, k: (b, 0, k)),   # h
                  pl.BlockSpec((1, C, tq), lambda b, q, k: (b, 0, q)),   # x (residual)
                  # constant index maps -> weights stay VMEM-resident across
                  # every (batch, q-tile, k-tile) step, no re-DMA.
                  pl.BlockSpec((C, C), lambda b, q, k: (0, 0)),          # W_out
                  pl.BlockSpec((C, 1), lambda b, q, k: (0, 0))],         # b_out
        out_specs=pl.BlockSpec((1, C, tq), lambda b, q, k: (b, 0, q)),
        scratch_shapes=[pltpu.VMEM((tq, 1), F32),        # running max m
                        pltpu.VMEM((tq, 1), F32),        # running denom l
                        pltpu.VMEM((tq, C), F32)],       # acc (q, channels)
        compiler_params=_cp(("parallel", "parallel", "arbitrary"),
                            block_bytes),
    )(f, g, h, x, w_o, b_o)


# ------------------------------- JAX glue ----------------------------------
def safe_cholesky(cov, eps=_EPS_CHOL):
    # jit-friendly version of Whiten.cholesky_dec: jnp cholesky yields NaNs
    # (instead of raising) for non-SPD input.  Plain factorization first
    # (reference behaviour), one eps*I retry via jnp.where (both run in
    # parallel, short serial chain), and a final identity clamp so NaN never
    # silently propagates into the fused kernels.
    C = cov.shape[-1]
    iden = jnp.eye(C, dtype=cov.dtype)
    L0 = jnp.linalg.cholesky(cov)
    L1 = jnp.linalg.cholesky(cov + eps * iden)
    bad0 = ~jnp.all(jnp.isfinite(L0), axis=(-2, -1), keepdims=True)
    L = jnp.where(bad0, L1, L0)
    bad = ~jnp.all(jnp.isfinite(L), axis=(-2, -1), keepdims=True)
    return jnp.where(bad, iden, L)


def content_sa_forward(params, content, *, cov_blk=None, tq=None, tk=None):
    B, C, H, W = content.shape
    x = content.reshape(B, C, H * W).astype(F32)

    cov = batched_cov(x, cov_blk)                        # Pallas (tiled reduction)
    L = safe_cholesky(cov)
    # torch.inverse(L) -> triangular solve (cheaper, more stable).
    eyeC = jnp.eye(C, dtype=F32)
    inv_L = jax.vmap(
        lambda l: jax.scipy.linalg.solve_triangular(l, eyeC, lower=True))(L)

    wf, bf = params['f']
    wg, bg = params['g']
    w_fg = jnp.concatenate([wf, wg], axis=0)             # stacked f/g weights
    b_fg = jnp.concatenate([bf, bg], axis=0)

    f, g, h = fused_projections(inv_L, x, w_fg, b_fg, *params['h'])
    out = flash_attention_out(f, g, h, x, *params['out'], tq=tq, tk=tk)
    return out.reshape(B, C, H, W)


# --------------------------- parameter creation -----------------------------
def init_conv1x1(key, cout, cin):
    kw, kb = jax.random.split(key)
    bound = 1.0 / (cin ** 0.5)
    w = jax.random.uniform(kw, (cout, cin), F32, -bound, bound)
    b = jax.random.uniform(kb, (cout, 1), F32, -bound, bound)
    return w, b


def init_params(key, C):
    kf, kg, kh, ko = jax.random.split(key, 4)
    return {'f': init_conv1x1(kf, C, C),
            'g': init_conv1x1(kg, C, C),
            'h': init_conv1x1(kh, C, C),
            'out': init_conv1x1(ko, C, C)}


# ----------------------------------- main -----------------------------------
if __name__ == "__main__":
    key = jax.random.PRNGKey(0)
    kp, kx = jax.random.split(key)

    B, C, H, W = 2, 8, 16, 16          # HW = 256 -> lane-dense, 2x2 q/k tiles
    content = jax.random.normal(kx, (B, C, H, W), F32)
    params = init_params(kp, C)

    fwd = jax.jit(content_sa_forward)
    out = jax.block_until_ready(fwd(params, content))

    assert out.shape == (B, C, H, W)
    assert bool(jnp.all(jnp.isfinite(out)))
    print("KERNEL_OK")
</pallas_src>

<mosaic_0001>
module attributes {stable_mosaic.version = 11 : i64} {
  func.func @_cov_kernel(%arg0: i32, %arg1: i32, %arg2: memref<1x8x128xf32, #tpu.memory_space<vmem>>, %arg3: memref<1x8x8xf32, #tpu.memory_space<vmem>>, %arg4: memref<8x1xf32, #tpu.memory_space<vmem>>, %arg5: memref<8x8xf32, #tpu.memory_space<vmem>>) attributes {dimension_semantics = [#tpu.dimension_semantics<parallel>, #tpu.dimension_semantics<arbitrary>], iteration_bounds = array<i64: 2, 2>, scalar_prefetch = 0 : i64, scratch_operands = 2 : i64, tpu.core_type = #tpu.core_type<tc>, window_params = [{transform_indices = @transform_0, window_bounds = array<i64: 1, 8, 128>}, {transform_indices = @transform_1, window_bounds = array<i64: 1, 8, 8>}]} {
    %c0_i32 = arith.constant 0 : i32
    %0 = arith.cmpi eq, %arg1, %c0_i32 : i32
    %1 = arith.extui %0 : i1 to i32
    %c0_i32_0 = arith.constant 0 : i32
    %2 = arith.cmpi ne, %1, %c0_i32_0 : i32
    scf.if %2 {
      %cst_13 = arith.constant 0.000000e+00 : f32
      %17 = vector.broadcast %cst_13 : f32 to vector<8x1xf32>
      %c0_14 = arith.constant 0 : index
      %c0_15 = arith.constant 0 : index
      %18 = vector.load %arg4[%c0_14, %c0_15] : memref<8x1xf32, #tpu.memory_space<vmem>>, vector<8x1xf32>
      tpu.vector_store %arg4[%c0_14, %c0_15], %17 {strides = array<i32>} : memref<8x1xf32, #tpu.memory_space<vmem>>, vector<8x1xf32>,
      %cst_16 = arith.constant 0.000000e+00 : f32
      %19 = vector.broadcast %cst_16 : f32 to vector<8x8xf32>
      %c0_17 = arith.constant 0 : index
      %c0_18 = arith.constant 0 : index
      %20 = vector.load %arg5[%c0_17, %c0_18] : memref<8x8xf32, #tpu.memory_space<vmem>>, vector<8x8xf32>
      tpu.vector_store %arg5[%c0_17, %c0_18], %19 {strides = array<i32>} : memref<8x8xf32, #tpu.memory_space<vmem>>, vector<8x8xf32>,
    } else {
    }
    %c0 = arith.constant 0 : index
    %c0_1 = arith.constant 0 : index
    %c0_2 = arith.constant 0 : index
    %3 = vector.load %arg2[%c0, %c0_1, %c0_2] : memref<1x8x128xf32, #tpu.memory_space<vmem>>, vector<1x8x128xf32>
    %4 = vector.shape_cast %3 : vector<1x8x128xf32> to vector<8x128xf32>
    %c0_3 = arith.constant 0 : index
    %c0_4 = arith.constant 0 : index
    %5 = vector.load %arg4[%c0_3, %c0_4] : memref<8x1xf32, #tpu.memory_space<vmem>>, vector<8x1xf32>
    %cst = arith.constant dense<0.000000e+00> : vector<8xf32>
    %6 = vector.multi_reduction <add>, %4, %cst [1] : vector<8x128xf32> to vector<8xf32>
    %7 = vector.shape_cast %6 : vector<8xf32> to vector<8x1xf32>
    %8 = arith.addf %5, %7 : vector<8x1xf32>
    %c0_5 = arith.constant 0 : index
    %c0_6 = arith.constant 0 : index
    %9 = vector.load %arg4[%c0_5, %c0_6] : memref<8x1xf32, #tpu.memory_space<vmem>>, vector<8x1xf32>
    tpu.vector_store %arg4[%c0_5, %c0_6], %8 {strides = array<i32>} : memref<8x1xf32, #tpu.memory_space<vmem>>, vector<8x1xf32>,
    %c0_7 = arith.constant 0 : index
    %c0_8 = arith.constant 0 : index
    %10 = vector.load %arg5[%c0_7, %c0_8] : memref<8x8xf32, #tpu.memory_space<vmem>>, vector<8x8xf32>
    %cst_9 = arith.constant dense<0.000000e+00> : vector<8x8xf32>
    %11 = tpu.matmul %4, %4, %cst_9 {dimension_numbers = #tpu.dot_dimension_numbers<[1], [1], [0], [0], [0, 0, 1, 0], [], []>} : vector<8x128xf32>, vector<8x128xf32>, vector<8x8xf32> -> vector<8x8xf32>
    %12 = arith.addf %10, %11 : vector<8x8xf32>
    %c0_10 = arith.constant 0 : index
    %c0_11 = arith.constant 0 : index
    %13 = vector.load %arg5[%c0_10, %c0_11] : memref<8x8xf32, #tpu.memory_space<vmem>>, vector<8x8xf32>
    tpu.vector_store %arg5[%c0_10, %c0_11], %12 {strides = array<i32>} : memref<8x8xf32, #tpu.memory_space<vmem>>, vector<8x8xf32>,
    %c1_i32 = arith.constant 1 : i32
    %14 = arith.cmpi eq, %arg1, %c1_i32 : i32
    %15 = arith.extui %14 : i1 to i32
    %c0_i32_12 = arith.constant 0 : i32
    %16 = arith.cmpi ne, %15, %c0_i32_12 : i32
    scf.if %16 {
      %c0_13 = arith.constant 0 : index
      %c0_14 = arith.constant 0 : index
      %17 = vector.load %arg4[%c0_13, %c0_14] : memref<8x1xf32, #tpu.memory_space<vmem>>, vector<8x1xf32>
      %cst_15 = arith.constant 3.906250e-03 : f32
      %18 = vector.broadcast %cst_15 : f32 to vector<8x1xf32>
      %19 = arith.mulf %17, %18 : vector<8x1xf32>
      %cst_16 = arith.constant dense<0.000000e+00> : vector<8x8xf32>
      %20 = tpu.matmul %19, %19, %cst_16 {dimension_numbers = #tpu.dot_dimension_numbers<[1], [1], [0], [0], [0, 0, 1, 0], [], []>} : vector<8x1xf32>, vector<8x1xf32>, vector<8x8xf32> -> vector<8x8xf32>
      %c0_17 = arith.constant 0 : index
      %c0_18 = arith.constant 0 : index
      %21 = vector.load %arg5[%c0_17, %c0_18] : memref<8x8xf32, #tpu.memory_space<vmem>>, vector<8x8xf32>
      %cst_19 = arith.constant 2.560000e+02 : f32
      %22 = vector.broadcast %cst_19 : f32 to vector<8x8xf32>
      %23 = arith.mulf %22, %20 : vector<8x8xf32>
      %24 = arith.subf %21, %23 : vector<8x8xf32>
      %cst_20 = arith.constant 0.00392156886 : f32
      %25 = vector.broadcast %cst_20 : f32 to vector<8x8xf32>
      %26 = arith.mulf %24, %25 : vector<8x8xf32>
      %c0_21 = arith.constant 0 : index
      %c0_22 = arith.constant 0 : index
      %c0_23 = arith.constant 0 : index
      %27 = vector.load %arg3[%c0_21, %c0_22, %c0_23] : memref<1x8x8xf32, #tpu.memory_space<vmem>>, vector<1x8x8xf32>
      %28 = vector.shape_cast %27 : vector<1x8x8xf32> to vector<8x8xf32>
      %29 = vector.shape_cast %26 : vector<8x8xf32> to vector<1x8x8xf32>
      tpu.vector_store %arg3[%c0_21, %c0_22, %c0_23], %29 {strides = array<i32>} : memref<1x8x8xf32, #tpu.memory_space<vmem>>, vector<1x8x8xf32>,
    } else {
    }
    return
  }
  func.func @transform_0(%arg0: i32, %arg1: i32) -> (i32, i32, i32) {
    %c0_i32 = arith.constant 0 : i32
    %c0_i32_0 = arith.constant 0 : i32
    return %arg0, %c0_i32, %arg1 : i32, i32, i32
  }
  func.func @transform_1(%arg0: i32, %arg1: i32) -> (i32, i32, i32) {
    %c0_i32 = arith.constant 0 : i32
    %c0_i32_0 = arith.constant 0 : i32
    %c0_i32_1 = arith.constant 0 : i32
    return %arg0, %c0_i32, %c0_i32_0 : i32, i32, i32
  }
}

module attributes {stable_mosaic.version = 11 : i64} {
  func.func @_attn_out_kernel(%arg0: i32, %arg1: i32, %arg2: i32, %arg3: memref<1x8x128xbf16, #tpu.memory_space<vmem>>, %arg4: memref<1x8x128xbf16, #tpu.memory_space<vmem>>, %arg5: memref<1x8x128xbf16, #tpu.memory_space<vmem>>, %arg6: memref<1x8x128xf32, #tpu.memory_space<vmem>>, %arg7: memref<8x8xf32, #tpu.memory_space<vmem>>, %arg8: memref<8x1xf32, #tpu.memory_space<vmem>>, %arg9: memref<1x8x128xf32, #tpu.memory_space<vmem>>, %arg10: memref<128x1xf32, #tpu.memory_space<vmem>>, %arg11: memref<128x1xf32, #tpu.memory_space<vmem>>, %arg12: memref<128x8xf32, #tpu.memory_space<vmem>>) attributes {dimension_semantics = [#tpu.dimension_semantics<parallel>, #tpu.dimension_semantics<parallel>, #tpu.dimension_semantics<arbitrary>], iteration_bounds = array<i64: 2, 2, 2>, scalar_prefetch = 0 : i64, scratch_operands = 3 : i64, tpu.core_type = #tpu.core_type<tc>, window_params = [{transform_indices = @transform_0, window_bounds = array<i64: 1, 8, 128>}, {transform_indices = @transform_1, window_bounds = array<i64: 1, 8, 128>}, {transform_indices = @transform_2, window_bounds = array<i64: 1, 8, 128>}, {transform_indices = @transform_3, window_bounds = array<i64: 1, 8, 128>}, {pipeline_mode = #tpu.pipeline_mode<synchronous>, transform_indices = @transform_4, window_bounds = array<i64: 8, 8>}, {pipeline_mode = #tpu.pipeline_mode<synchronous>, transform_indices = @transform_5, window_bounds = array<i64: 8, 1>}, {transform_indices = @transform_6, window_bounds = array<i64: 1, 8, 128>}]} {
    %c0_i32 = arith.constant 0 : i32
    %0 = arith.cmpi eq, %arg2, %c0_i32 : i32
    %1 = arith.extui %0 : i1 to i32
    %c0_i32_0 = arith.constant 0 : i32
    %2 = arith.cmpi ne, %1, %c0_i32_0 : i32
    scf.if %2 {
      %cst_27 = arith.constant 0xFF800000 : f32
      %37 = vector.broadcast %cst_27 : f32 to vector<128x1xf32>
      %c0_28 = arith.constant 0 : index
      %c0_29 = arith.constant 0 : index
      %38 = vector.load %arg10[%c0_28, %c0_29] : memref<128x1xf32, #tpu.memory_space<vmem>>, vector<128x1xf32>
      tpu.vector_store %arg10[%c0_28, %c0_29], %37 {strides = array<i32>} : memref<128x1xf32, #tpu.memory_space<vmem>>, vector<128x1xf32>,
      %cst_30 = arith.constant 0.000000e+00 : f32
      %39 = vector.broadcast %cst_30 : f32 to vector<128x1xf32>
      %c0_31 = arith.constant 0 : index
      %c0_32 = arith.constant 0 : index
      %40 = vector.load %arg11[%c0_31, %c0_32] : memref<128x1xf32, #tpu.memory_space<vmem>>, vector<128x1xf32>
      tpu.vector_store %arg11[%c0_31, %c0_32], %39 {strides = array<i32>} : memref<128x1xf32, #tpu.memory_space<vmem>>, vector<128x1xf32>,
      %cst_33 = arith.constant 0.000000e+00 : f32
      %41 = vector.broadcast %cst_33 : f32 to vector<128x8xf32>
      %c0_34 = arith.constant 0 : index
      %c0_35 = arith.constant 0 : index
      %42 = vector.load %arg12[%c0_34, %c0_35] : memref<128x8xf32, #tpu.memory_space<vmem>>, vector<128x8xf32>
      tpu.vector_store %arg12[%c0_34, %c0_35], %41 {strides = array<i32>} : memref<128x8xf32, #tpu.memory_space<vmem>>, vector<128x8xf32>,
    } else {
    }
    %c0 = arith.constant 0 : index
    %c0_1 = arith.constant 0 : index
    %c0_2 = arith.constant 0 : index
    %3 = vector.load %arg3[%c0, %c0_1, %c0_2] : memref<1x8x128xbf16, #tpu.memory_space<vmem>>, vector<1x8x128xbf16>
    %4 = vector.shape_cast %3 : vector<1x8x128xbf16> to vector<8x128xbf16>
    %c0_3 = arith.constant 0 : index
    %c0_4 = arith.constant 0 : index
    %c0_5 = arith.constant 0 : index
    %5 = vector.load %arg4[%c0_3, %c0_4, %c0_5] : memref<1x8x128xbf16, #tpu.memory_space<vmem>>, vector<1x8x128xbf16>
    %6 = vector.shape_cast %5 : vector<1x8x128xbf16> to vector<8x128xbf16>
    %c0_6 = arith.constant 0 : index
    %c0_7 = arith.constant 0 : index
    %c0_8 = arith.constant 0 : index
    %7 = vector.load %arg5[%c0_6, %c0_7, %c0_8] : memref<1x8x128xbf16, #tpu.memory_space<vmem>>, vector<1x8x128xbf16>
    %8 = vector.shape_cast %7 : vector<1x8x128xbf16> to vector<8x128xbf16>
    %cst = arith.constant dense<0.000000e+00> : vector<128x128xf32>
    %9 = tpu.matmul %4, %6, %cst {dimension_numbers = #tpu.dot_dimension_numbers<[0], [0], [1], [1], [0, 1, 1, 1], [], []>} : vector<8x128xbf16>, vector<8x128xbf16>, vector<128x128xf32> -> vector<128x128xf32>
    %c0_9 = arith.constant 0 : index
    %c0_10 = arith.constant 0 : index
    %10 = vector.load %arg10[%c0_9, %c0_10] : memref<128x1xf32, #tpu.memory_space<vmem>>, vector<128x1xf32>
    %cst_11 = arith.constant dense<0xFF800000> : vector<128xf32>
    %11 = vector.multi_reduction <maximumf>, %9, %cst_11 [1] : vector<128x128xf32> to vector<128xf32>
    %12 = vector.shape_cast %11 : vector<128xf32> to vector<128x1xf32>
    %13 = arith.maximumf %10, %12 : vector<128x1xf32>
    %c0_12 = arith.constant 0 : index
    %c0_13 = arith.constant 0 : index
    %14 = vector.load %arg10[%c0_12, %c0_13] : memref<128x1xf32, #tpu.memory_space<vmem>>, vector<128x1xf32>
    %15 = arith.subf %14, %13 : vector<128x1xf32>
    %16 = math.exp %15 : vector<128x1xf32>
    %17 = vector.broadcast %13 : vector<128x1xf32> to vector<128x128xf32>
    %18 = arith.subf %9, %17 : vector<128x128xf32>
    %19 = math.exp %18 : vector<128x128xf32>
    %c0_14 = arith.constant 0 : index
    %c0_15 = arith.constant 0 : index
    %20 = vector.load %arg11[%c0_14, %c0_15] : memref<128x1xf32, #tpu.memory_space<vmem>>, vector<128x1xf32>
    %21 = arith.mulf %16, %20 : vector<128x1xf32>
    %cst_16 = arith.constant dense<0.000000e+00> : vector<128xf32>
    %22 = vector.multi_reduction <add>, %19, %cst_16 [1] : vector<128x128xf32> to vector<128xf32>
    %23 = vector.shape_cast %22 : vector<128xf32> to vector<128x1xf32>
    %24 = arith.addf %21, %23 : vector<128x1xf32>
    %c0_17 = arith.constant 0 : index
    %c0_18 = arith.constant 0 : index
    %25 = vector.load %arg11[%c0_17, %c0_18] : memref<128x1xf32, #tpu.memory_space<vmem>>, vector<128x1xf32>
    tpu.vector_store %arg11[%c0_17, %c0_18], %24 {strides = array<i32>} : memref<128x1xf32, #tpu.memory_space<vmem>>, vector<128x1xf32>,
    %c0_19 = arith.constant 0 : index
    %c0_20 = arith.constant 0 : index
    %26 = vector.load %arg12[%c0_19, %c0_20] : memref<128x8xf32, #tpu.memory_space<vmem>>, vector<128x8xf32>
    %27 = vector.broadcast %16 : vector<128x1xf32> to vector<128x8xf32>
    %28 = arith.mulf %27, %26 : vector<128x8xf32>
    %29 = arith.truncf %19 : vector<128x128xf32> to vector<128x128xbf16>
    %cst_21 = arith.constant dense<0.000000e+00> : vector<128x8xf32>
    %30 = tpu.matmul %29, %8, %cst_21 {dimension_numbers = #tpu.dot_dimension_numbers<[1], [1], [0], [0], [0, 0, 1, 0], [], []>} : vector<128x128xbf16>, vector<8x128xbf16>, vector<128x8xf32> -> vector<128x8xf32>
    %31 = arith.addf %28, %30 : vector<128x8xf32>
    %c0_22 = arith.constant 0 : index
    %c0_23 = arith.constant 0 : index
    %32 = vector.load %arg12[%c0_22, %c0_23] : memref<128x8xf32, #tpu.memory_space<vmem>>, vector<128x8xf32>
    tpu.vector_store %arg12[%c0_22, %c0_23], %31 {strides = array<i32>} : memref<128x8xf32, #tpu.memory_space<vmem>>, vector<128x8xf32>,
    %c0_24 = arith.constant 0 : index
    %c0_25 = arith.constant 0 : index
    %33 = vector.load %arg10[%c0_24, %c0_25] : memref<128x1xf32, #tpu.memory_space<vmem>>, vector<128x1xf32>
    tpu.vector_store %arg10[%c0_24, %c0_25], %13 {strides = array<i32>} : memref<128x1xf32, #tpu.memory_space<vmem>>, vector<128x1xf32>,
    %c1_i32 = arith.constant 1 : i32
    %34 = arith.cmpi eq, %arg2, %c1_i32 : i32
    %35 = arith.extui %34 : i1 to i32
    %c0_i32_26 = arith.constant 0 : i32
    %36 = arith.cmpi ne, %35, %c0_i32_26 : i32
    scf.if %36 {
      %c0_27 = arith.constant 0 : index
      %c0_28 = arith.constant 0 : index
      %37 = vector.load %arg12[%c0_27, %c0_28] : memref<128x8xf32, #tpu.memory_space<vmem>>, vector<128x8xf32>
      %c0_29 = arith.constant 0 : index
      %c0_30 = arith.constant 0 : index
      %38 = vector.load %arg11[%c0_29, %c0_30] : memref<128x1xf32, #tpu.memory_space<vmem>>, vector<128x1xf32>
      %39 = tpu.reciprocal %38 {approx = true} : vector<128x1xf32> -> vector<128x1xf32>
      %40 = vector.broadcast %39 : vector<128x1xf32> to vector<128x8xf32>
      %41 = arith.mulf %37, %40 : vector<128x8xf32>
      %c0_31 = arith.constant 0 : index
      %c0_32 = arith.constant 0 : index
      %42 = vector.load %arg7[%c0_31, %c0_32] : memref<8x8xf32, #tpu.memory_space<vmem>>, vector<8x8xf32>
      %43 = arith.truncf %42 : vector<8x8xf32> to vector<8x8xbf16>
      %44 = arith.truncf %41 : vector<128x8xf32> to vector<128x8xbf16>
      %cst_33 = arith.constant dense<0.000000e+00> : vector<8x128xf32>
      %45 = tpu.matmul %43, %44, %cst_33 {dimension_numbers = #tpu.dot_dimension_numbers<[1], [1], [0], [0], [0, 0, 1, 0], [], []>} : vector<8x8xbf16>, vector<128x8xbf16>, vector<8x128xf32> -> vector<8x128xf32>
      %c0_34 = arith.constant 0 : index
      %c0_35 = arith.constant 0 : index
      %46 = vector.load %arg8[%c0_34, %c0_35] : memref<8x1xf32, #tpu.memory_space<vmem>>, vector<8x1xf32>
      %47 = vector.broadcast %46 : vector<8x1xf32> to vector<8x128xf32>
      %48 = arith.addf %45, %47 : vector<8x128xf32>
      %c0_36 = arith.constant 0 : index
      %c0_37 = arith.constant 0 : index
      %c0_38 = arith.constant 0 : index
      %49 = vector.load %arg6[%c0_36, %c0_37, %c0_38] : memref<1x8x128xf32, #tpu.memory_space<vmem>>, vector<1x8x128xf32>
      %50 = vector.shape_cast %49 : vector<1x8x128xf32> to vector<8x128xf32>
      %51 = arith.addf %48, %50 : vector<8x128xf32>
      %c0_39 = arith.constant 0 : index
      %c0_40 = arith.constant 0 : index
      %c0_41 = arith.constant 0 : index
      %52 = vector.load %arg9[%c0_39, %c0_40, %c0_41] : memref<1x8x128xf32, #tpu.memory_space<vmem>>, vector<1x8x128xf32>
      %53 = vector.shape_cast %52 : vector<1x8x128xf32> to vector<8x128xf32>
      %54 = vector.shape_cast %51 : vector<8x128xf32> to vector<1x8x128xf32>
      tpu.vector_store %arg9[%c0_39, %c0_40, %c0_41], %54 {strides = array<i32>} : memref<1x8x128xf32, #tpu.memory_space<vmem>>, vector<1x8x128xf32>,
    } else {
    }
    return
  }
  func.func @transform_0(%arg0: i32, %arg1: i32, %arg2: i32) -> (i32, i32, i32) {
    %c0_i32 = arith.constant 0 : i32
    %c0_i32_0 = arith.constant 0 : i32
    return %arg0, %c0_i32, %arg1 : i32, i32, i32
  }
  func.func @transform_1(%arg0: i32, %arg1: i32, %arg2: i32) -> (i32, i32, i32) {
    %c0_i32 = arith.constant 0 : i32
    %c0_i32_0 = arith.constant 0 : i32
    return %arg0, %c0_i32, %arg2 : i32, i32, i32
  }
  func.func @transform_2(%arg0: i32, %arg1: i32, %arg2: i32) -> (i32, i32, i32) {
    %c0_i32 = arith.constant 0 : i32
    %c0_i32_0 = arith.constant 0 : i32
    return %arg0, %c0_i32, %arg2 : i32, i32, i32
  }
  func.func @transform_3(%arg0: i32, %arg1: i32, %arg2: i32) -> (i32, i32, i32) {
    %c0_i32 = arith.constant 0 : i32
    %c0_i32_0 = arith.constant 0 : i32
    return %arg0, %c0_i32, %arg1 : i32, i32, i32
  }
  func.func @transform_4(%arg0: i32, %arg1: i32, %arg2: i32) -> (i32, i32) {
    %c0_i32 = arith.constant 0 : i32
    %c0_i32_0 = arith.constant 0 : i32
    %c0_i32_1 = arith.constant 0 : i32
    return %c0_i32, %c0_i32_0 : i32, i32
  }
  func.func @transform_5(%arg0: i32, %arg1: i32, %arg2: i32) -> (i32, i32) {
    %c0_i32 = arith.constant 0 : i32
    %c0_i32_0 = arith.constant 0 : i32
    %c0_i32_1 = arith.constant 0 : i32
    return %c0_i32, %c0_i32_0 : i32, i32
  }
  func.func @transform_6(%arg0: i32, %arg1: i32, %arg2: i32) -> (i32, i32, i32) {
    %c0_i32 = arith.constant 0 : i32
    %c0_i32_0 = arith.constant 0 : i32
    return %arg0, %c0_i32, %arg1 : i32, i32, i32
  }
}

module attributes {stable_mosaic.version = 11 : i64} {
  func.func @_proj_kernel(%arg0: i32, %arg1: memref<1x8x8xf32, #tpu.memory_space<vmem>>, %arg2: memref<1x8x256xf32, #tpu.memory_space<vmem>>, %arg3: memref<16x8xf32, #tpu.memory_space<vmem>>, %arg4: memref<16x1xf32, #tpu.memory_space<vmem>>, %arg5: memref<8x8xf32, #tpu.memory_space<vmem>>, %arg6: memref<8x1xf32, #tpu.memory_space<vmem>>, %arg7: memref<1x8x256xbf16, #tpu.memory_space<vmem>>, %arg8: memref<1x8x256xbf16, #tpu.memory_space<vmem>>, %arg9: memref<1x8x256xbf16, #tpu.memory_space<vmem>>) attributes {dimension_semantics = [#tpu.dimension_semantics<parallel>], iteration_bounds = array<i64: 2>, scalar_prefetch = 0 : i64, scratch_operands = 0 : i64, tpu.core_type = #tpu.core_type<tc>, window_params = [{transform_indices = @transform_0, window_bounds = array<i64: 1, 8, 8>}, {transform_indices = @transform_1, window_bounds = array<i64: 1, 8, 256>}, {pipeline_mode = #tpu.pipeline_mode<synchronous>, transform_indices = @transform_2, window_bounds = array<i64: 16, 8>}, {pipeline_mode = #tpu.pipeline_mode<synchronous>, transform_indices = @transform_3, window_bounds = array<i64: 16, 1>}, {pipeline_mode = #tpu.pipeline_mode<synchronous>, transform_indices = @transform_4, window_bounds = array<i64: 8, 8>}, {pipeline_mode = #tpu.pipeline_mode<synchronous>, transform_indices = @transform_5, window_bounds = array<i64: 8, 1>}, {transform_indices = @transform_6, window_bounds = array<i64: 1, 8, 256>}, {transform_indices = @transform_7, window_bounds = array<i64: 1, 8, 256>}, {transform_indices = @transform_8, window_bounds = array<i64: 1, 8, 256>}]} {
    %c0 = arith.constant 0 : index
    %c0_0 = arith.constant 0 : index
    %c0_1 = arith.constant 0 : index
    %0 = vector.load %arg2[%c0, %c0_0, %c0_1] : memref<1x8x256xf32, #tpu.memory_space<vmem>>, vector<1x8x256xf32>
    %1 = vector.shape_cast %0 : vector<1x8x256xf32> to vector<8x256xf32>
    %cst = arith.constant dense<0.000000e+00> : vector<8xf32>
    %2 = vector.multi_reduction <add>, %1, %cst [1] : vector<8x256xf32> to vector<8xf32>
    %3 = vector.shape_cast %2 : vector<8xf32> to vector<8x1xf32>
    %cst_2 = arith.constant 2.560000e+02 : f32
    %4 = vector.broadcast %cst_2 : f32 to vector<8x1xf32>
    %5 = arith.divf %3, %4 : vector<8x1xf32>
    %6 = vector.broadcast %5 : vector<8x1xf32> to vector<8x256xf32>
    %7 = arith.subf %1, %6 : vector<8x256xf32>
    %c0_3 = arith.constant 0 : index
    %c0_4 = arith.constant 0 : index
    %c0_5 = arith.constant 0 : index
    %8 = vector.load %arg1[%c0_3, %c0_4, %c0_5] : memref<1x8x8xf32, #tpu.memory_space<vmem>>, vector<1x8x8xf32>
    %9 = vector.shape_cast %8 : vector<1x8x8xf32> to vector<8x8xf32>
    %cst_6 = arith.constant dense<0.000000e+00> : vector<8x256xf32>
    %10 = tpu.matmul %9, %7, %cst_6 {dimension_numbers = #tpu.dot_dimension_numbers<[1], [0], [0], [1], [0, 0, 1, 1], [], []>} : vector<8x8xf32>, vector<8x256xf32>, vector<8x256xf32> -> vector<8x256xf32>
    %cst_7 = arith.constant dense<0.000000e+00> : vector<8xf32>
    %11 = vector.multi_reduction <add>, %10, %cst_7 [1] : vector<8x256xf32> to vector<8xf32>
    %12 = vector.shape_cast %11 : vector<8xf32> to vector<8x1xf32>
    %cst_8 = arith.constant 2.560000e+02 : f32
    %13 = vector.broadcast %cst_8 : f32 to vector<8x1xf32>
    %14 = arith.divf %12, %13 : vector<8x1xf32>
    %15 = vector.broadcast %14 : vector<8x1xf32> to vector<8x256xf32>
    %16 = arith.subf %10, %15 : vector<8x256xf32>
    %17 = arith.mulf %16, %16 : vector<8x256xf32>
    %cst_9 = arith.constant dense<0.000000e+00> : vector<8xf32>
    %18 = vector.multi_reduction <add>, %17, %cst_9 [1] : vector<8x256xf32> to vector<8xf32>
    %19 = vector.shape_cast %18 : vector<8xf32> to vector<8x1xf32>
    %cst_10 = arith.constant 0.00392156886 : f32
    %20 = vector.broadcast %cst_10 : f32 to vector<8x1xf32>
    %21 = arith.mulf %19, %20 : vector<8x1xf32>
    %cst_11 = arith.constant 9.99999974E-6 : f32
    %22 = vector.broadcast %cst_11 : f32 to vector<8x1xf32>
    %23 = arith.addf %21, %22 : vector<8x1xf32>
    %24 = math.rsqrt %23 : vector<8x1xf32>
    %25 = vector.broadcast %24 : vector<8x1xf32> to vector<8x256xf32>
    %26 = arith.mulf %16, %25 : vector<8x256xf32>
    %c0_12 = arith.constant 0 : index
    %c0_13 = arith.constant 0 : index
    %27 = vector.load %arg3[%c0_12, %c0_13] : memref<16x8xf32, #tpu.memory_space<vmem>>, vector<16x8xf32>
    %28 = arith.truncf %27 : vector<16x8xf32> to vector<16x8xbf16>
    %29 = arith.truncf %26 : vector<8x256xf32> to vector<8x256xbf16>
    %cst_14 = arith.constant dense<0.000000e+00> : vector<16x256xf32>
    %30 = tpu.matmul %28, %29, %cst_14 {dimension_numbers = #tpu.dot_dimension_numbers<[1], [0], [0], [1], [0, 0, 1, 1], [], []>} : vector<16x8xbf16>, vector<8x256xbf16>, vector<16x256xf32> -> vector<16x256xf32>
    %c0_15 = arith.constant 0 : index
    %c0_16 = arith.constant 0 : index
    %31 = vector.load %arg4[%c0_15, %c0_16] : memref<16x1xf32, #tpu.memory_space<vmem>>, vector<16x1xf32>
    %32 = vector.broadcast %31 : vector<16x1xf32> to vector<16x256xf32>
    %33 = arith.addf %30, %32 : vector<16x256xf32>
    %c0_17 = arith.constant 0 : index
    %c0_18 = arith.constant 0 : index
    %34 = vector.load %arg5[%c0_17, %c0_18] : memref<8x8xf32, #tpu.memory_space<vmem>>, vector<8x8xf32>
    %35 = arith.truncf %34 : vector<8x8xf32> to vector<8x8xbf16>
    %36 = arith.truncf %1 : vector<8x256xf32> to vector<8x256xbf16>
    %cst_19 = arith.constant dense<0.000000e+00> : vector<8x256xf32>
    %37 = tpu.matmul %35, %36, %cst_19 {dimension_numbers = #tpu.dot_dimension_numbers<[1], [0], [0], [1], [0, 0, 1, 1], [], []>} : vector<8x8xbf16>, vector<8x256xbf16>, vector<8x256xf32> -> vector<8x256xf32>
    %c0_20 = arith.constant 0 : index
    %c0_21 = arith.constant 0 : index
    %38 = vector.load %arg6[%c0_20, %c0_21] : memref<8x1xf32, #tpu.memory_space<vmem>>, vector<8x1xf32>
    %39 = vector.broadcast %38 : vector<8x1xf32> to vector<8x256xf32>
    %40 = arith.addf %37, %39 : vector<8x256xf32>
    %41 = vector.extract_strided_slice %33 {offsets = [0, 0], sizes = [8, 256], strides = [1, 1]} : vector<16x256xf32> to vector<8x256xf32>
    %42 = arith.truncf %41 : vector<8x256xf32> to vector<8x256xbf16>
    %c0_22 = arith.constant 0 : index
    %c0_23 = arith.constant 0 : index
    %c0_24 = arith.constant 0 : index
    %43 = vector.load %arg7[%c0_22, %c0_23, %c0_24] : memref<1x8x256xbf16, #tpu.memory_space<vmem>>, vector<1x8x256xbf16>
    %44 = vector.shape_cast %43 : vector<1x8x256xbf16> to vector<8x256xbf16>
    %45 = vector.shape_cast %42 : vector<8x256xbf16> to vector<1x8x256xbf16>
    tpu.vector_store %arg7[%c0_22, %c0_23, %c0_24], %45 {strides = array<i32>} : memref<1x8x256xbf16, #tpu.memory_space<vmem>>, vector<1x8x256xbf16>,
    %46 = vector.extract_strided_slice %33 {offsets = [8, 0], sizes = [8, 256], strides = [1, 1]} : vector<16x256xf32> to vector<8x256xf32>
    %47 = arith.truncf %46 : vector<8x256xf32> to vector<8x256xbf16>
    %c0_25 = arith.constant 0 : index
    %c0_26 = arith.constant 0 : index
    %c0_27 = arith.constant 0 : index
    %48 = vector.load %arg8[%c0_25, %c0_26, %c0_27] : memref<1x8x256xbf16, #tpu.memory_space<vmem>>, vector<1x8x256xbf16>
    %49 = vector.shape_cast %48 : vector<1x8x256xbf16> to vector<8x256xbf16>
    %50 = vector.shape_cast %47 : vector<8x256xbf16> to vector<1x8x256xbf16>
    tpu.vector_store %arg8[%c0_25, %c0_26, %c0_27], %50 {strides = array<i32>} : memref<1x8x256xbf16, #tpu.memory_space<vmem>>, vector<1x8x256xbf16>,
    %51 = arith.truncf %40 : vector<8x256xf32> to vector<8x256xbf16>
    %c0_28 = arith.constant 0 : index
    %c0_29 = arith.constant 0 : index
    %c0_30 = arith.constant 0 : index
    %52 = vector.load %arg9[%c0_28, %c0_29, %c0_30] : memref<1x8x256xbf16, #tpu.memory_space<vmem>>, vector<1x8x256xbf16>
    %53 = vector.shape_cast %52 : vector<1x8x256xbf16> to vector<8x256xbf16>
    %54 = vector.shape_cast %51 : vector<8x256xbf16> to vector<1x8x256xbf16>
    tpu.vector_store %arg9[%c0_28, %c0_29, %c0_30], %54 {strides = array<i32>} : memref<1x8x256xbf16, #tpu.memory_space<vmem>>, vector<1x8x256xbf16>,
    return
  }
  func.func @transform_0(%arg0: i32) -> (i32, i32, i32) {
    %c0_i32 = arith.constant 0 : i32
    %c0_i32_0 = arith.constant 0 : i32
    %c0_i32_1 = arith.constant 0 : i32
    return %arg0, %c0_i32, %c0_i32_0 : i32, i32, i32
  }
  func.func @transform_1(%arg0: i32) -> (i32, i32, i32) {
    %c0_i32 = arith.constant 0 : i32
    %c0_i32_0 = arith.constant 0 : i32
    %c0_i32_1 = arith.constant 0 : i32
    return %arg0, %c0_i32, %c0_i32_0 : i32, i32, i32
  }
  func.func @transform_2(%arg0: i32) -> (i32, i32) {
    %c0_i32 = arith.constant 0 : i32
    %c0_i32_0 = arith.constant 0 : i32
    %c0_i32_1 = arith.constant 0 : i32
    return %c0_i32, %c0_i32_0 : i32, i32
  }
  func.func @transform_3(%arg0: i32) -> (i32, i32) {
    %c0_i32 = arith.constant 0 : i32
    %c0_i32_0 = arith.constant 0 : i32
    %c0_i32_1 = arith.constant 0 : i32
    return %c0_i32, %c0_i32_0 : i32, i32
  }
  func.func @transform_4(%arg0: i32) -> (i32, i32) {
    %c0_i32 = arith.constant 0 : i32
    %c0_i32_0 = arith.constant 0 : i32
    %c0_i32_1 = arith.constant 0 : i32
    return %c0_i32, %c0_i32_0 : i32, i32
  }
  func.func @transform_5(%arg0: i32) -> (i32, i32) {
    %c0_i32 = arith.constant 0 : i32
    %c0_i32_0 = arith.constant 0 : i32
    %c0_i32_1 = arith.constant 0 : i32
    return %c0_i32, %c0_i32_0 : i32, i32
  }
  func.func @transform_6(%arg0: i32) -> (i32, i32, i32) {
    %c0_i32 = arith.constant 0 : i32
    %c0_i32_0 = arith.constant 0 : i32
    %c0_i32_1 = arith.constant 0 : i32
    return %arg0, %c0_i32, %c0_i32_0 : i32, i32, i32
  }
  func.func @transform_7(%arg0: i32) -> (i32, i32, i32) {
    %c0_i32 = arith.constant 0 : i32
    %c0_i32_0 = arith.constant 0 : i32
    %c0_i32_1 = arith.constant 0 : i32
    return %arg0, %c0_i32, %c0_i32_0 : i32, i32, i32
  }
  func.func @transform_8(%arg0: i32) -> (i32, i32, i32) {
    %c0_i32 = arith.constant 0 : i32
    %c0_i32_0 = arith.constant 0 : i32
    %c0_i32_1 = arith.constant 0 : i32
    return %arg0, %c0_i32, %c0_i32_0 : i32, i32, i32
  }
}

</mosaic_0001>

<bundles_post_ra>
// kernel: custom-call.6
= control target key start
LH: loop header
LB: loop body
LE: loop exit
PB: predicated region body
PF: predicated region fallthrough
CT: control target
= control target key end

     0   :  { %s543_s6 = smov 0   ;;  %s545_s7 = smov 0   ;;  %s623_s0 = inlined_call_operand.vmem [shape: f32[2,8,8], index: 0, kind: input, shape index: {}]   ;;  %s624_s1 = inlined_call_operand.vmem [shape: f32[2,8,8], index: 1, kind: output, shape index: {}]  }
   0x1   :  { %s547_s8 = smov 0  }
   0x2 LB: > { %s441_s9 = sadd.s32 4294967295, %s530_s8   ;;  %s26_s10 = sadd.s32 1, %s526_s7  ;;  %s530_s8 = sphi %s547_s8, %s7_s8   ;;  %s526_s7 = sphi %s545_s7, %s626_s7   ;;  %s522_s6 = sphi %s543_s6, %s625_s6  }
   0x3   : > { %p28_p0 = scmp.ge.s32.totalorder %s26_s10, 2  ;;  %p443_p1 = scmp.ge.s32.totalorder %s530_s8, 2 }
   0x4   : > { %s42_s11 = sand.u32 (!%p443_p1), 1, %s530_s8   ;;  %s445_s12 = sshll.u32 (!%p443_p1), %s526_s7, 3 }
   0x5   : > { %s628_s10 = smov (%p28_p0, %s26_s10), 0  ;;  %40 = sbr.rel (%p443_p1) target bundleno = 12 (0xc), region = 16 }
   0x6   : > { %s444_s13 = sshll.u32 (!%p443_p1), %s42_s11, 3  ;;  %s48_s16 = scalar_lea.vmem (!%p443_p1), %s623_s0, %s445_s12 }
   0x7   : > { %s44_s17 = scalar_lea.vmem (!%p443_p1), [#allocation0], %s444_s13 }
   0xa   : > { %v77_v0 = vld [vmem:[%s48_s16] sm:$0xff] }
   0xb   : > { %78 = vst [vmem:[%s44_s17] sm:$0xff] %v77_v0 }
   0xc PF: > { %p446_p2 = scmp.ge.s32.totalorder %s530_s8, 1  ;;  %p83_p3 = scmp.lt.s32.totalorder %s530_s8, 3 }
   0xe   : > { %p84_p4 = pnand %p446_p2, %p83_p3 }
   0xf   : > { %s90_s18 = sand.u32 (!%p84_p4), 1, %s441_s9   ;;  %s464_s22 = sshll.u32 (!%p84_p4), %s522_s6, 3 }
  0x10   : > { %87 = sbr.rel (%p84_p4) target bundleno = 1230 (0x4ce), region = 54  ;;  %s447_s19 = sshll.u32 (!%p84_p4), %s90_s18, 3 }
  0x11   : > { %s570_s20 = scalar_lea.vmem (!%p84_p4), [#allocation1], %s447_s19  ;;  %s574_s21 = scalar_lea.vmem (!%p84_p4), [#allocation0], %s447_s19 }
  0x12   : > { %s353_s25 = scalar_lea.vmem (!%p84_p4), %s624_s1, %s464_s22 }
  0x15   : > { %v532_v1 = vmov 0.0   ;;  %v104_v5 = vld [vmem:[%s574_s21] ss:$0 sm:$0xff]  ;;  %vm102_vm3 = vcmask 7168   ;;  %v450_v23 = vld [vmem:[%s574_s21 + $0x1] ss:$0 sm:$0xff] }
  0x16   : > { %101 = vst [vmem:[%s570_s20] sm:$0xff] %v532_v1  ;;  %v578_v13 = vld [vmem:[%s574_s21] sm:$0xff]  ;;  %vm129_vm5 = vcmask 15368   ;;  %vm155_vm6 = vcmask 1047553   ;;  %vm160_vm11 = vcmask 23568   ;;  %vm186_vm12 = vcmask 1047554  }
  0x17   : > { %vm156_vm9 = vmand %vm129_vm5, %vm155_vm6  ;;  %v452_v41 = vld [vmem:[%s574_s21 + $0x2] ss:$0 sm:$0xff]  ;;  %v454_v59 = vld [vmem:[%s574_s21 + $0x3] ss:$0 sm:$0xff] }
  0x18   : > { %vm187_vm15 = vmand %vm160_vm11, %vm186_vm12 }
  0x1d   : > { %v103_v2 = vld [vmem:[%s570_s20] ss:$0 sm:$0xff] }
  0x1e   : > { %v105_v3 = vmul.f32 %v103_v2, %v103_v2  ;;  %v121_v4 = vmul.f32 0.0, %v103_v2 }
  0x20   : > { %106 = vadd.xlane.f32.xlu0 %v105_v3 }
  0x28   : > { %122 = vadd.xlane.f32.xlu0 %v121_v4 }
  0x93   : > { %v107_v6 = vpop.xlane.xlu0 %106 }
  0x94   : > { %v108_v7 = vsub.f32 %v104_v5, %v107_v6 }
  0x96   : > { %492 = vrsqrt.f32 %v108_v7  ;;  %vm115_vm1 = vweird.f32 %v108_v7 }
  0x9b   : > { %v123_v12 = vpop.xlane.xlu0 %122 }
  0x9c   : > { %v493_v8 = vpop.eup %492  ;;  %v124_v15 = vsub.f32 %v578_v13, %v123_v12 }
  0x9d   : > { %v110_v9 = vmul.f32 %v493_v8, %v108_v7  ;;  %vm116_vm0 = vweird.f32 %v493_v8 }
  0x9e   : > { %vm117_vm2 = vmor %vm115_vm1, %vm116_vm0  ;;  %vm191_vm1 = vcmask 31768  }
  0x9f   : > { %v111_v10 = vmul.f32 %v493_v8, %v110_v9 }
  0xa1   : > { %v112_v11 = vmul.f32 0.5, %v111_v10 }
  0xa3   : > { %v113_v14 = vsub.f32 1.5, %v112_v11 }
  0xa5   : > { %v114_v16 = vmul.f32 %v493_v8, %v113_v14  ;;  %v456_v14 = vld [vmem:[%s574_s21 + $0x4] ss:$0 sm:$0xff] }
  0xa7   : > { %v118_v17 = vsel %vm117_vm2, %v493_v8, %v114_v16  ;;  %vm217_vm2 = vcmask 1047555  }
  0xa8   : > { %v125_v18 = vmul.f32 %v124_v15, %v118_v17  ;;  %vm218_vm5 = vmand %vm191_vm1, %vm217_vm2 }
  0xaa   : > { %v126_v19 = vsel %vm102_vm3, %v125_v18, 0.0 }
  0xab   : > { %128 = vst [vmem:[%s570_s20] sm:$0xff] %v126_v19 }
  0xb2   : > { %v449_v20 = vld [vmem:[%s570_s20 + $0x1] ss:$0 sm:$0xff] }
  0xb3   : > { %v134_v21 = vmul.f32 %v449_v20, %v449_v20  ;;  %v150_v22 = vmul.f32 %v449_v20, %v126_v19 }
  0xb5   : > { %135 = vadd.xlane.f32.xlu1 %v134_v21 }
  0xbd   : > { %151 = vadd.xlane.f32.xlu1 %v150_v22 }
 0x128   : > { %v136_v24 = vpop.xlane.xlu1 %135 }
 0x129   : > { %v137_v25 = vsub.f32 %v450_v23, %v136_v24 }
 0x12b   : > { %494 = vrsqrt.f32 %v137_v25  ;;  %vm144_vm7 = vweird.f32 %v137_v25 }
 0x130   : > { %v152_v31 = vpop.xlane.xlu1 %151 }
 0x131   : > { %v495_v26 = vpop.eup %494  ;;  %v153_v33 = vsub.f32 %v578_v13, %v152_v31 }
 0x132   : > { %v139_v27 = vmul.f32 %v495_v26, %v137_v25  ;;  %vm145_vm4 = vweird.f32 %v495_v26 }
 0x133   : > { %vm146_vm8 = vmor %vm144_vm7, %vm145_vm4  ;;  %vm222_vm7 = vcmask 39968  }
 0x134   : > { %v140_v28 = vmul.f32 %v495_v26, %v139_v27 }
 0x136   : > { %v141_v29 = vmul.f32 0.5, %v140_v28 }
 0x138   : > { %v142_v30 = vsub.f32 1.5, %v141_v29 }
 0x13a   : > { %v143_v32 = vmul.f32 %v495_v26, %v142_v30 }
 0x13c   : > { %v147_v34 = vsel %vm146_vm8, %v495_v26, %v143_v32  ;;  %vm248_vm8 = vcmask 1047556   ;;  %v458_v32 = vld [vmem:[%s574_s21 + $0x5] ss:$0 sm:$0xff] }
 0x13d   : > { %v154_v35 = vmul.f32 %v153_v33, %v147_v34  ;;  %vm249_vm11 = vmand %vm222_vm7, %vm248_vm8 }
 0x13f   : > { %v157_v36 = vsel %vm156_vm9, %v154_v35, 0.0 }
 0x140   : > { %v158_v37 = vadd.f32 %v157_v36, %v126_v19 }
 0x142   : > { %159 = vst [vmem:[%s570_s20] sm:$0xff] %v158_v37 }
 0x149   : > { %v451_v38 = vld [vmem:[%s570_s20 + $0x2] ss:$0 sm:$0xff] }
 0x14a   : > { %v165_v39 = vmul.f32 %v451_v38, %v451_v38  ;;  %v181_v40 = vmul.f32 %v451_v38, %v158_v37 }
 0x14c   : > { %166 = vadd.xlane.f32.xlu2 %v165_v39 }
 0x154   : > { %182 = vadd.xlane.f32.xlu2 %v181_v40 }
 0x1bf   : > { %v167_v42 = vpop.xlane.xlu2 %166 }
 0x1c0   : > { %v168_v43 = vsub.f32 %v452_v41, %v167_v42 }
 0x1c2   : > { %496 = vrsqrt.f32 %v168_v43  ;;  %vm175_vm13 = vweird.f32 %v168_v43 }
 0x1c7   : > { %v183_v49 = vpop.xlane.xlu2 %182 }
 0x1c8   : > { %v497_v44 = vpop.eup %496  ;;  %v184_v51 = vsub.f32 %v578_v13, %v183_v49 }
 0x1c9   : > { %v170_v45 = vmul.f32 %v497_v44, %v168_v43  ;;  %vm176_vm10 = vweird.f32 %v497_v44 }
 0x1ca   : > { %vm177_vm14 = vmor %vm175_vm13, %vm176_vm10  ;;  %vm253_vm13 = vcmask 48168  }
 0x1cb   : > { %v171_v46 = vmul.f32 %v497_v44, %v170_v45 }
 0x1cd   : > { %v172_v47 = vmul.f32 0.5, %v171_v46 }
 0x1cf   : > { %v173_v48 = vsub.f32 1.5, %v172_v47 }
 0x1d1   : > { %v174_v50 = vmul.f32 %v497_v44, %v173_v48 }
 0x1d3   : > { %v178_v52 = vsel %vm177_vm14, %v497_v44, %v174_v50  ;;  %vm279_vm14 = vcmask 1047557   ;;  %v460_v50 = vld [vmem:[%s574_s21 + $0x6] ss:$0 sm:$0xff] }
 0x1d4   : > { %v185_v53 = vmul.f32 %v184_v51, %v178_v52  ;;  %vm280_vm1 = vmand %vm253_vm13, %vm279_vm14 }
 0x1d6   : > { %v188_v54 = vsel %vm187_vm15, %v185_v53, 0.0 }
 0x1d7   : > { %v189_v55 = vadd.f32 %v188_v54, %v158_v37 }
 0x1d9   : > { %190 = vst [vmem:[%s570_s20] sm:$0xff] %v189_v55 }
 0x1e0   : > { %v453_v56 = vld [vmem:[%s570_s20 + $0x3] ss:$0 sm:$0xff] }
 0x1e1   : > { %v212_v57 = vmul.f32 %v453_v56, %v189_v55  ;;  %v196_v58 = vmul.f32 %v453_v56, %v453_v56 }
 0x1e3   : > { %213 = vadd.xlane.f32.xlu1 %v212_v57  ;;  %197 = vadd.xlane.f32.xlu0 %v196_v58 }
 0x256   : > { %v198_v60 = vpop.xlane.xlu0 %197  ;;  %v214_v2 = vpop.xlane.xlu1 %213 }
 0x257   : > { %v199_v61 = vsub.f32 %v454_v59, %v198_v60  ;;  %v215_v5 = vsub.f32 %v578_v13, %v214_v2 }
 0x259   : > { %498 = vrsqrt.f32 %v199_v61  ;;  %vm206_vm3 = vweird.f32 %v199_v61 }
 0x25f   : > { %v499_v62 = vpop.eup %498 }
 0x260   : > { %v201_v63 = vmul.f32 %v499_v62, %v199_v61  ;;  %vm207_vm0 = vweird.f32 %v499_v62 }
 0x261   : > { %vm208_vm4 = vmor %vm206_vm3, %vm207_vm0  ;;  %vm284_vm3 = vcmask 56368  }
 0x262   : > { %v202_v0 = vmul.f32 %v499_v62, %v201_v63 }
 0x264   : > { %v203_v1 = vmul.f32 0.5, %v202_v0 }
 0x266   : > { %v204_v3 = vsub.f32 1.5, %v203_v1 }
 0x268   : > { %v205_v4 = vmul.f32 %v499_v62, %v204_v3 }
 0x26a   : > { %v209_v6 = vsel %vm208_vm4, %v499_v62, %v205_v4  ;;  %vm310_vm4 = vcmask 1047558   ;;  %v462_v4 = vld [vmem:[%s574_s21 + $0x7] ss:$0 sm:$0xff] }
 0x26b   : > { %v216_v7 = vmul.f32 %v215_v5, %v209_v6  ;;  %vm311_vm7 = vmand %vm284_vm3, %vm310_vm4 }
 0x26d   : > { %v219_v8 = vsel %vm218_vm5, %v216_v7, 0.0 }
 0x26e   : > { %v220_v9 = vadd.f32 %v219_v8, %v189_v55 }
 0x270   : > { %221 = vst [vmem:[%s570_s20] sm:$0xff] %v220_v9 }
 0x277   : > { %v455_v10 = vld [vmem:[%s570_s20 + $0x4] ss:$0 sm:$0xff] }
 0x278   : > { %v243_v11 = vmul.f32 %v455_v10, %v220_v9  ;;  %v227_v12 = vmul.f32 %v455_v10, %v455_v10 }
 0x27a   : > { %244 = vadd.xlane.f32.xlu0 %v243_v11  ;;  %228 = vadd.xlane.f32.xlu2 %v227_v12 }
 0x2ed   : > { %v229_v15 = vpop.xlane.xlu2 %228  ;;  %v245_v21 = vpop.xlane.xlu0 %244 }
 0x2ee   : > { %v230_v16 = vsub.f32 %v456_v14, %v229_v15  ;;  %v246_v24 = vsub.f32 %v578_v13, %v245_v21 }
 0x2f0   : > { %500 = vrsqrt.f32 %v230_v16  ;;  %vm237_vm9 = vweird.f32 %v230_v16 }
 0x2f6   : > { %v501_v17 = vpop.eup %500 }
 0x2f7   : > { %v232_v18 = vmul.f32 %v501_v17, %v230_v16  ;;  %vm238_vm6 = vweird.f32 %v501_v17 }
 0x2f8   : > { %vm239_vm10 = vmor %vm237_vm9, %vm238_vm6  ;;  %vm315_vm9 = vcmask 64568  }
 0x2f9   : > { %v233_v19 = vmul.f32 %v501_v17, %v232_v18 }
 0x2fb   : > { %v234_v20 = vmul.f32 0.5, %v233_v19 }
 0x2fd   : > { %v235_v22 = vsub.f32 1.5, %v234_v20 }
 0x2ff   : > { %v236_v23 = vmul.f32 %v501_v17, %v235_v22 }
 0x301   : > { %v240_v25 = vsel %vm239_vm10, %v501_v17, %v236_v23  ;;  %vm341_vm10 = vcmask 1047559  }
 0x302   : > { %v247_v26 = vmul.f32 %v246_v24, %v240_v25  ;;  %vm342_vm13 = vmand %vm315_vm9, %vm341_vm10 }
 0x304   : > { %v250_v27 = vsel %vm249_vm11, %v247_v26, 0.0 }
 0x305   : > { %v251_v28 = vadd.f32 %v250_v27, %v220_v9 }
 0x307   : > { %252 = vst [vmem:[%s570_s20] sm:$0xff] %v251_v28 }
 0x30e   : > { %v457_v29 = vld [vmem:[%s570_s20 + $0x5] ss:$0 sm:$0xff] }
 0x30f   : > { %v274_v30 = vmul.f32 %v457_v29, %v251_v28  ;;  %v258_v31 = vmul.f32 %v457_v29, %v457_v29 }
 0x311   : > { %275 = vadd.xlane.f32.xlu2 %v274_v30  ;;  %259 = vadd.xlane.f32.xlu1 %v258_v31 }
 0x384   : > { %v260_v33 = vpop.xlane.xlu1 %259  ;;  %v276_v39 = vpop.xlane.xlu2 %275 }
 0x385   : > { %v261_v34 = vsub.f32 %v458_v32, %v260_v33  ;;  %v277_v42 = vsub.f32 %v578_v13, %v276_v39 }
 0x387   : > { %502 = vrsqrt.f32 %v261_v34  ;;  %vm268_vm15 = vweird.f32 %v261_v34 }
 0x38d   : > { %v503_v35 = vpop.eup %502 }
 0x38e   : > { %v263_v36 = vmul.f32 %v503_v35, %v261_v34  ;;  %vm269_vm12 = vweird.f32 %v503_v35 }
 0x38f   : > { %vm270_vm0 = vmor %vm268_vm15, %vm269_vm12 }
 0x390   : > { %v264_v37 = vmul.f32 %v503_v35, %v263_v36 }
 0x392   : > { %v265_v38 = vmul.f32 0.5, %v264_v37 }
 0x394   : > { %v266_v40 = vsub.f32 1.5, %v265_v38 }
 0x396   : > { %v267_v41 = vmul.f32 %v503_v35, %v266_v40 }
 0x398   : > { %v271_v43 = vsel %vm270_vm0, %v503_v35, %v267_v41 }
 0x399   : > { %v278_v44 = vmul.f32 %v277_v42, %v271_v43 }
 0x39b   : > { %v281_v45 = vsel %vm280_vm1, %v278_v44, 0.0 }
 0x39c   : > { %v282_v46 = vadd.f32 %v281_v45, %v251_v28 }
 0x39e   : > { %283 = vst [vmem:[%s570_s20] sm:$0xff] %v282_v46 }
 0x3a5   : > { %v459_v47 = vld [vmem:[%s570_s20 + $0x6] ss:$0 sm:$0xff] }
 0x3a6   : > { %v305_v48 = vmul.f32 %v459_v47, %v282_v46  ;;  %v289_v49 = vmul.f32 %v459_v47, %v459_v47 }
 0x3a8   : > { %306 = vadd.xlane.f32.xlu1 %v305_v48  ;;  %290 = vadd.xlane.f32.xlu0 %v289_v49 }
 0x41b   : > { %v291_v51 = vpop.xlane.xlu0 %290  ;;  %v307_v57 = vpop.xlane.xlu1 %306 }
 0x41c   : > { %v292_v52 = vsub.f32 %v460_v50, %v291_v51  ;;  %v308_v60 = vsub.f32 %v578_v13, %v307_v57 }
 0x41e   : > { %504 = vrsqrt.f32 %v292_v52  ;;  %vm299_vm5 = vweird.f32 %v292_v52 }
 0x424   : > { %v505_v53 = vpop.eup %504 }
 0x425   : > { %v294_v54 = vmul.f32 %v505_v53, %v292_v52  ;;  %vm300_vm2 = vweird.f32 %v505_v53 }
 0x426   : > { %vm301_vm6 = vmor %vm299_vm5, %vm300_vm2 }
 0x427   : > { %v295_v55 = vmul.f32 %v505_v53, %v294_v54 }
 0x429   : > { %v296_v56 = vmul.f32 0.5, %v295_v55 }
 0x42b   : > { %v297_v58 = vsub.f32 1.5, %v296_v56 }
 0x42d   : > { %v298_v59 = vmul.f32 %v505_v53, %v297_v58 }
 0x42f   : > { %v302_v61 = vsel %vm301_vm6, %v505_v53, %v298_v59 }
 0x430   : > { %v309_v62 = vmul.f32 %v308_v60, %v302_v61 }
 0x432   : > { %v312_v63 = vsel %vm311_vm7, %v309_v62, 0.0 }
 0x433   : > { %v313_v0 = vadd.f32 %v312_v63, %v282_v46 }
 0x435   : > { %314 = vst [vmem:[%s570_s20] sm:$0xff] %v313_v0 }
 0x43c   : > { %v461_v1 = vld [vmem:[%s570_s20 + $0x7] ss:$0 sm:$0xff] }
 0x43d   : > { %v336_v2 = vmul.f32 %v461_v1, %v313_v0  ;;  %v320_v3 = vmul.f32 %v461_v1, %v461_v1 }
 0x43f   : > { %337 = vadd.xlane.f32.xlu0 %v336_v2  ;;  %321 = vadd.xlane.f32.xlu2 %v320_v3 }
 0x4b2   : > { %v322_v5 = vpop.xlane.xlu2 %321  ;;  %v338_v11 = vpop.xlane.xlu0 %337 }
 0x4b3   : > { %v323_v6 = vsub.f32 %v462_v4, %v322_v5  ;;  %v339_v15 = vsub.f32 %v578_v13, %v338_v11 }
 0x4b5   : > { %506 = vrsqrt.f32 %v323_v6  ;;  %vm330_vm11 = vweird.f32 %v323_v6 }
 0x4bb   : > { %v507_v7 = vpop.eup %506 }
 0x4bc   : > { %v325_v8 = vmul.f32 %v507_v7, %v323_v6  ;;  %vm331_vm8 = vweird.f32 %v507_v7 }
 0x4bd   : > { %vm332_vm12 = vmor %vm330_vm11, %vm331_vm8 }
 0x4be   : > { %v326_v9 = vmul.f32 %v507_v7, %v325_v8 }
 0x4c0   : > { %v327_v10 = vmul.f32 0.5, %v326_v9 }
 0x4c2   : > { %v328_v12 = vsub.f32 1.5, %v327_v10 }
 0x4c4   : > { %v329_v14 = vmul.f32 %v507_v7, %v328_v12 }
 0x4c6   : > { %v333_v16 = vsel %vm332_vm12, %v507_v7, %v329_v14 }
 0x4c7   : > { %v340_v17 = vmul.f32 %v339_v15, %v333_v16 }
 0x4c9   : > { %v343_v18 = vsel %vm342_vm13, %v340_v17, 0.0 }
 0x4ca   : > { %v344_v19 = vadd.f32 %v343_v18, %v313_v0 }
 0x4cc   : > { %345 = vst [vmem:[%s570_s20] sm:$0xff] %v344_v19 }
 0x4cd   : > { %383 = vst [vmem:[%s353_s25] sm:$0xff] %v344_v19 }
 0x4ce PF: > { %s7_s8 = sadd.s32 1, %s530_s8   ;;  %s625_s6 = smov %s526_s7 }
 0x4cf   : > { %p4_p5 = scmp.ge.s32.totalorder %s7_s8, 4   ;;  %s626_s7 = smov %s628_s10 }
 0x4d1   :  { %6 = sbr.rel (!%p4_p5) target bundleno = 2 (0x2), region = 132 }

// kernel: custom-call.4
= control target key start
LH: loop header
LB: loop body
LE: loop exit
PB: predicated region body
PF: predicated region fallthrough
CT: control target
= control target key end

     0   :  { %s413_s6 = smov 0   ;;  %s415_s7 = smov 0   ;;  %s478_s0 = inlined_call_operand.vmem [shape: f32[2,1,8,8], index: 0, kind: input, shape index: {}]   ;;  %s479_s1 = inlined_call_operand.vmem [shape: f32[2,1,8,8], index: 1, kind: output, shape index: {}]  }
   0x1   :  { %s417_s8 = smov 0  }
   0x2 LB: > { %s339_s9 = sadd.s32 4294967295, %s400_s8   ;;  %s33_s10 = sadd.s32 1, %s396_s7  ;;  %s400_s8 = sphi %s417_s8, %s7_s8   ;;  %s396_s7 = sphi %s415_s7, %s481_s7   ;;  %s392_s6 = sphi %s413_s6, %s480_s6  }
   0x3   : > { %p35_p0 = scmp.ge.s32.totalorder %s33_s10, 2  ;;  %p341_p1 = scmp.ge.s32.totalorder %s400_s8, 2 }
   0x4   : > { %s49_s11 = sand.u32 (!%p341_p1), 1, %s400_s8   ;;  %s343_s12 = sshll.u32 (!%p341_p1), %s396_s7, 3 }
   0x5   : > { %s483_s10 = smov (%p35_p0, %s33_s10), 0  ;;  %47 = sbr.rel (%p341_p1) target bundleno = 12 (0xc), region = 16 }
   0x6   : > { %s342_s13 = sshll.u32 (!%p341_p1), %s49_s11, 3  ;;  %s56_s16 = scalar_lea.vmem (!%p341_p1), %s478_s0, %s343_s12 }
   0x7   : > { %s51_s17 = scalar_lea.vmem (!%p341_p1), [#allocation0], %s342_s13 }
   0xa   : > { %v85_v0 = vld [vmem:[%s56_s16] sm:$0xff] }
   0xb   : > { %86 = vst [vmem:[%s51_s17] sm:$0xff] %v85_v0 }
   0xc PF: > { %p344_p2 = scmp.ge.s32.totalorder %s400_s8, 1  ;;  %p91_p3 = scmp.lt.s32.totalorder %s400_s8, 3 }
   0xe   : > { %p92_p4 = pnand %p344_p2, %p91_p3 }
  0x10   : > { %95 = sbr.rel (%p92_p4) target bundleno = 1009 (0x3f1), region = 54 }
  0x15   : > { %s98_s18 = sand.u32 1, %s339_s9   ;;  %v109_v1 = vlaneseq  ;;  %v402_v19 = vmov -1.0   ;;  %s348_s21 = sshll.u32 %s392_s6, 3 }
  0x16   : > { %s345_s19 = sshll.u32 %s98_s18, 3  ;;  %s246_s24 = scalar_lea.vmem %s479_s1, %s348_s21 }
  0x17   : > { %v440_v2 = vand.u32 127, %v109_v1  ;;  %v113_v3 = vshrl.u32 %v109_v1, 7  ;;  %s100_s20 = scalar_lea.vmem [#allocation0], %s345_s19 }
  0x18   : > { %v116_v4 = vld [vmem:[%s100_s20] sm:$0xff] }
  0x19   : > { %vm115_vm0 = vcmp.eq.s32.totalorder %v113_v3, %v440_v2  ;;  %vm111_vm1 = vcmp.lt.s32.totalorder %v440_v2, 8  ;;  %vm120_vm2 = vcmp.ge.s32.totalorder %v113_v3, %v440_v2  ;;  %vm147_vm8 = vcmp.eq.s32.totalorder %v440_v2, 0 }
  0x1a   : > { %v117_v5 = vsel %vm115_vm0, %v116_v4, 0.0  ;;  %vm121_vm3 = vmand %vm120_vm2, %vm111_vm1  ;;  %vm144_vm9 = vcmp.eq.s32.totalorder %v440_v2, %v113_v3  ;;  %v148_v20 = vsel %vm147_vm8, 1.0, %v402_v19  ;;  %vm155_vm10 = vcmp.eq.s32.totalorder %v440_v2, 1 }
  0x1b   : > { %118 = vadd.xlane.f32.xlu0 %v117_v5  ;;  %v122_v14 = vsel %vm121_vm3, %v116_v4, 0.0  ;;  %v149_v21 = vsel %vm144_vm9, %v148_v20, 0.0  ;;  %vm165_vm11 = vcmp.eq.s32.totalorder %v440_v2, 2  ;;  %vm175_vm12 = vcmp.eq.s32.totalorder %v440_v2, 3 }
  0x1c   : > { %vm185_vm13 = vcmp.eq.s32.totalorder %v440_v2, 4  ;;  %vm195_vm14 = vcmp.eq.s32.totalorder %v440_v2, 5  ;;  %vm205_vm15 = vcmp.eq.s32.totalorder %v440_v2, 6  ;;  %vm215_vm0 = vcmp.eq.s32.totalorder %v440_v2, 7 }
  0x8e   : > { %v443_v6 = vpop.xlane.xlu0 %118 }
  0x8f   : > { %376 = vrcp.f32 %v443_v6  ;;  %v134_v10 = vand.u32 2147483648, %v443_v6  ;;  %v132_v12 = vand.u32 2147483647, %v443_v6  ;;  %vm128_vm5 = vweird.f32 %v443_v6 }
  0x91   : > { %v135_v15 = vor.u32 1.1754944e-38, %v134_v10  ;;  %vm133_vm7 = vcmp.eq.f32.partialorder %v132_v12, 8.507059e+37 }
  0x95   : > { %v377_v7 = vpop.eup %376 }
  0x96   : > { %v124_v8 = vmul.f32 %v377_v7, %v443_v6  ;;  %vm129_vm4 = vweird.f32 %v377_v7 }
  0x97   : > { %vm130_vm6 = vmor %vm128_vm5, %vm129_vm4 }
  0x98   : > { %v125_v9 = vsub.f32 1.0, %v124_v8 }
  0x9a   : > { %v126_v11 = vmul.f32 %v377_v7, %v125_v9 }
  0x9c   : > { %v127_v13 = vadd.f32 %v377_v7, %v126_v11 }
  0x9e   : > { %v131_v16 = vsel %vm130_vm6, %v377_v7, %v127_v13 }
  0x9f   : > { %v136_v17 = vsel %vm133_vm7, %v135_v15, %v131_v16 }
  0xa0   : > { %v137_v18 = vmul.f32 %v136_v17, %v122_v14 }
  0xa2   : > { %138 = vst [vmem:[#allocation2] sm:$0xff] %v137_v18 }
  0xa9   : > { %v151_v22 = vld [vmem:[#allocation2 + $0x1] ss:$0 sm:$0xff]  ;;  %v161_v25 = vld [vmem:[#allocation2 + $0x2] ss:$0 sm:$0xff]  ;;  %v171_v30 = vld [vmem:[#allocation2 + $0x3] ss:$0 sm:$0xff] }
  0xaa   : > { %v152_v23 = vxor.u32 2147483648, %v151_v22  ;;  %v162_v27 = vxor.u32 2147483648, %v161_v25  ;;  %v172_v32 = vxor.u32 2147483648, %v171_v30  ;;  %v181_v35 = vld [vmem:[#allocation2 + $0x4] ss:$0 sm:$0xff] }
  0xab   : > { %v182_v37 = vxor.u32 2147483648, %v181_v35  ;;  %v191_v40 = vld [vmem:[#allocation2 + $0x5] ss:$0 sm:$0xff]  ;;  %v201_v45 = vld [vmem:[#allocation2 + $0x6] ss:$0 sm:$0xff] }
  0xac   : > { %v156_v24 = vmul.f32 %v152_v23, %v149_v21  ;;  %v192_v42 = vxor.u32 2147483648, %v191_v40  ;;  %v202_v47 = vxor.u32 2147483648, %v201_v45  ;;  %v211_v50 = vld [vmem:[#allocation2 + $0x7] ss:$0 sm:$0xff] }
  0xad   : > { %v212_v52 = vxor.u32 2147483648, %v211_v50 }
  0xae   : > { %157 = vadd.xlane.f32.xlu0 %v156_v24 }
 0x121   : > { %v158_v26 = vpop.xlane.xlu0 %157 }
 0x122   : > { %v159_v28 = vsel %vm155_vm10, %v158_v26, %v149_v21 }
 0x123   : > { %v166_v29 = vmul.f32 %v162_v27, %v159_v28 }
 0x125   : > { %167 = vadd.xlane.f32.xlu1 %v166_v29 }
 0x198   : > { %v168_v31 = vpop.xlane.xlu1 %167 }
 0x199   : > { %v169_v33 = vsel %vm165_vm11, %v168_v31, %v159_v28 }
 0x19a   : > { %v176_v34 = vmul.f32 %v172_v32, %v169_v33 }
 0x19c   : > { %177 = vadd.xlane.f32.xlu1 %v176_v34 }
 0x20f   : > { %v178_v36 = vpop.xlane.xlu1 %177 }
 0x210   : > { %v179_v38 = vsel %vm175_vm12, %v178_v36, %v169_v33 }
 0x211   : > { %v186_v39 = vmul.f32 %v182_v37, %v179_v38 }
 0x213   : > { %187 = vadd.xlane.f32.xlu2 %v186_v39 }
 0x286   : > { %v188_v41 = vpop.xlane.xlu2 %187 }
 0x287   : > { %v189_v43 = vsel %vm185_vm13, %v188_v41, %v179_v38 }
 0x288   : > { %v196_v44 = vmul.f32 %v192_v42, %v189_v43 }
 0x28a   : > { %197 = vadd.xlane.f32.xlu2 %v196_v44 }
 0x2fd   : > { %v198_v46 = vpop.xlane.xlu2 %197 }
 0x2fe   : > { %v199_v48 = vsel %vm195_vm14, %v198_v46, %v189_v43 }
 0x2ff   : > { %v206_v49 = vmul.f32 %v202_v47, %v199_v48 }
 0x301   : > { %207 = vadd.xlane.f32.xlu0 %v206_v49 }
 0x374   : > { %v208_v51 = vpop.xlane.xlu0 %207 }
 0x375   : > { %v209_v53 = vsel %vm205_vm15, %v208_v51, %v199_v48 }
 0x376   : > { %v216_v54 = vmul.f32 %v212_v52, %v209_v53 }
 0x378   : > { %217 = vadd.xlane.f32.xlu1 %v216_v54 }
 0x3eb   : > { %v218_v55 = vpop.xlane.xlu1 %217 }
 0x3ec   : > { %v219_v56 = vsel %vm215_vm0, %v218_v55, %v209_v53 }
 0x3ed   : > { %v234_v57 = vmul.f32 %v219_v56, %v136_v17 }
 0x3ef   : > { %v236_v58 = vsel %vm128_vm5, %v219_v56, %v234_v57 }
 0x3f0   : > { %276 = vst [vmem:[%s246_s24] sm:$0xff] %v236_v58 }
 0x3f1 PF: > { %s7_s8 = sadd.s32 1, %s400_s8   ;;  %s480_s6 = smov %s396_s7 }
 0x3f2   : > { %p4_p5 = scmp.ge.s32.totalorder %s7_s8, 4   ;;  %s481_s7 = smov %s483_s10 }
 0x3f4   :  { %6 = sbr.rel (!%p4_p5) target bundleno = 2 (0x2), region = 125 }

// kernel: content_sa_forward.3
= control target key start
LH: loop header
LB: loop body
LE: loop exit
PB: predicated region body
PF: predicated region fallthrough
CT: control target
= control target key end

     0   :  { %s387_s6 = smov 0   ;;  %s389_s7 = smov 0   ;;  %s447_s0 = inlined_call_operand.vmem [shape: f32[2,8,256], index: 0, kind: input, shape index: {}]   ;;  %s448_s1 = inlined_call_operand.vmem [shape: f32[2,8,8], index: 1, kind: output, shape index: {}]  }
   0x1   :  { %s391_s8 = smov 0   ;;  %s393_s9 = smov 0  }
   0x2   :  { %s395_s10 = smov 0  }
   0x3 LB: > { %s20_s11 = sadd.s32 1, %s366_s8  ;;  %s23_s12 = sadd.s32 1, %s370_s9  ;;  %s374_s10 = sphi %s395_s10, %s11_s10   ;;  %s370_s9 = sphi %s393_s9, %s452_s9   ;;  %s366_s8 = sphi %s391_s8, %s451_s8   ;;  %s362_s7 = sphi %s389_s7, %s450_s7   ;;  %s358_s6 = sphi %s387_s6, %s449_s6  }
   0x4   : > { %p21_p0 = scmp.ge.s32.totalorder %s20_s11, 2  ;;  %p285_p1 = scmp.ge.s32.totalorder %s374_s10, 1 }
   0x5   : > { %p104_p2 = scmp.lt.s32.totalorder %s374_s10, 5 }
   0x6   : > { %s454_s11 = smov (%p21_p0, %s20_s11), 0  ;;  %s456_s12 = smov (!%p21_p0, %s23_s12), %s370_s9 }
   0x7   : > { %p105_p3 = pnand %p285_p1, %p104_p2  ;;  %p25_p4 = scmp.ge.s32.totalorder %s456_s12, 2 }
   0x8   : > { %p126_p5 = scmp.lt.s32.totalorder (!%p105_p3), %s362_s7, 1  ;;  %p128_p6 = scmp.lt.s32.totalorder (!%p105_p3), %s358_s6, 1 }
   0x9   : > { %s458_s12 = smov (%p25_p4, %s456_s12), 0  ;;  %108 = sbr.rel (%p105_p3) target bundleno = 298 (0x12a), region = 24 }
   0xa   : > { %p289_p7 = scmp.ne.s32.totalorder (!%p105_p3), %s358_s6, 0 }
   0xe   : > { %s460_s7 = smov (!%p126_p5, %s362_s7), 1 }
   0xf   : > { %s129_s13 = scalar_select %p128_p6, %s358_s6, 1 }
  0x10   : > { %s286_s14 = sshll.u32 %s460_s7, 1  ;;  %s288_s15 = sshll.u32 %s460_s7, 3 }
  0x11   : > { %s131_s16 = sadd.s32 %s286_s14, %s129_s13  ;;  %s424_s19 = scalar_lea.vmem %s448_s1, %s288_s15 }
  0x12   : > { %s287_s20 = sshll.u32 %s131_s16, 3  ;;  %141 = sbr.rel (%p289_p7) target bundleno = 26 (0x1a), region = 28 }
  0x13   : > { %s133_s23 = scalar_lea.vmem %s447_s0, %s287_s20 }
  0x17   : > { %vm142_vm0 = vcmask 7168   ;;  %vm144_vm1 = vcmask 64512   ;;  %v376_v0 = vmov 0.0  }
  0x18   : > { %143 = vst.msk [vmem:[#allocation2] sm:$0xff] %vm142_vm0, %v376_v0 }
  0x19   : > { %145 = vst.msk [vmem:[#allocation3] sm:$0xff] %vm144_vm1, %v376_v0 }
  0x1a PF: > { %v146_v1 = vld [vmem:[%s133_s23] sm:$0xff]  ;;  %vm151_vm2 = vcmask 7168   ;;  %vm175_vm3 = vcmask 64512   ;;  %p290_p8 = scmp.ne.s32.totalorder %s358_s6, 1 }
  0x1b   : > { %169 = vmatpush.xpose.msra.mxu0 %v146_v1  ;;  %148 = vadd.xlane.f32.xlu0 %v146_v1 }
  0x1e   : > { %170 = vmatmul.f32.vlgmr.msra.gmra.mxu0 %v146_v1 }
  0x1f   : > { %v147_v2 = vld [vmem:[#allocation2] sm:$0xff] }
  0x20   : > { %v153_v5 = vld [vmem:[#allocation3] sm:$0xff] }
  0x8e   : > { %v149_v3 = vpop.xlane.xlu0 %148 }
  0x8f   : > { %v150_v4 = vadd.f32 %v149_v3, %v147_v2 }
  0x91   : > { %152 = vst.msk [vmem:[#allocation2] sm:$0xff] %vm151_vm2, %v150_v4 }
  0x9a   : > { %180 = sbr.rel (%p290_p8) target bundleno = 298 (0x12a), region = 32 }
  0x9b   : > { %v171_v6 = vpop.f32.mrf.mxu0 }
  0x9c   : > { %v174_v7 = vadd.f32 %v171_v6, %v153_v5 }
  0x9e   : > { %176 = vst.msk [vmem:[#allocation3] sm:$0xff] %vm175_vm3, %v174_v7 }
  0x9f   : > { %v181_v8 = vld [vmem:[#allocation2] sm:$0xff] }
  0xa0   : > { %v182_v9 = vmul.f32 0.00390625, %v181_v8 }
  0xa2   : > { %291 = vmatpush.xpose.msk.msra.mxu0 %vm151_vm2, %v182_v9 }
  0xa5   : > { %292 = vmatmul.msk.f32.vlgmr.msra.gmra.mxu0 %vm151_vm2, %v182_v9  ;;  %v206_v11 = vld [vmem:[#allocation3] sm:$0xff] }
 0x122   : > { %v203_v10 = vpop.f32.mrf.mxu0 }
 0x123   : > { %v207_v12 = vmul.f32 256.0, %v203_v10 }
 0x125   : > { %v208_v13 = vsub.f32 %v206_v11, %v207_v12 }
 0x127   : > { %v209_v14 = vmul.f32 0.003921569, %v208_v13 }
 0x129   : > { %210 = vst.msk [vmem:[%s424_s19] sm:$0xff] %vm175_vm3, %v209_v14 }
 0x12a PF: > { %s11_s10 = sadd.s32 1, %s374_s10   ;;  %s449_s6 = smov %s366_s8 }
 0x12b   : > { %p8_p9 = scmp.ge.s32.totalorder %s11_s10, 6   ;;  %s450_s7 = smov %s370_s9 }
 0x12c   : > { %s451_s8 = smov %s454_s11  ;;  %s452_s9 = smov %s458_s12 }
 0x12d   :  { %10 = sbr.rel (!%p8_p9) target bundleno = 3 (0x3), region = 62 }

// kernel: content_sa_forward.4
= control target key start
LH: loop header
LB: loop body
LE: loop exit
PB: predicated region body
PF: predicated region fallthrough
CT: control target
= control target key end

     0   :  { %s771_s27 = smov 0   ;;  %s831_s0 = inlined_call_operand.vmem [shape: f32[2,8,8], index: 0, kind: input, shape index: {}]   ;;  %s832_s1 = inlined_call_operand.vmem [shape: f32[2,8,256], index: 1, kind: input, shape index: {}]   ;;  %s833_s2 = inlined_call_operand.vmem [shape: f32[16,8], index: 2, kind: input, shape index: {}]   ;;  %s834_s3 = inlined_call_operand.vmem [shape: f32[16,1], index: 3, kind: input, shape index: {}]   ;;  %s835_s4 = inlined_call_operand.vmem [shape: f32[8,8], index: 4, kind: input, shape index: {}]   ;;  %s836_s5 = inlined_call_operand.vmem [shape: f32[8,1], index: 5, kind: input, shape index: {}]   ;;  %s837_s6 = inlined_call_operand.vmem [shape: bf16[2,8,256], index: 6, kind: output, shape index: {0}]   ;;  %s838_s7 = inlined_call_operand.vmem [shape: bf16[2,8,256], index: 7, kind: output, shape index: {1}]   ;;  %s839_s8 = inlined_call_operand.vmem [shape: bf16[2,8,256], index: 8, kind: output, shape index: {2}]  }
   0x1 LB: > { %s673_s28 = sadd.s32 4294967295, %s722_s27   ;;  %p677_p0 = scmp.ge.s32.totalorder %s722_s27, 1  ;;  %s722_s27 = sphi %s771_s27, %s19_s27  }
   0x2   : > { %p276_p1 = scmp.lt.s32.totalorder %s722_s27, 3 }
   0x4   : > { %p277_p2 = pnand %p677_p0, %p276_p1 }
   0x5   : > { %p324_p3 = scmp.lt.s32.totalorder (!%p277_p2), %s673_s28, 1 }
   0x6   : > { %280 = sbr.rel (%p277_p2) target bundleno = 681 (0x2a9), region = 44 }
   0xb   : > { %s841_s28 = smov (!%p324_p3, %s673_s28), 1  ;;  %v724_v3 = vmov 256.0   ;;  %vm365_vm1 = vcmask 64512   ;;  %vm454_vm2 = vcmask 1043456   ;;  %v489_v29 = vld [vmem:[%s835_s4] sm:$0xff]  ;;  %v440_v31 = vld [vmem:[%s834_s3 + $0x8] sm:$0xff] }
   0xc   : > { %s695_s29 = sshll.u32 %s841_s28, 4  ;;  %712 = vrcp.f32 %v724_v3  ;;  %s782_s11 = sshll.u32 %s841_s28, 3  ;;  %v439_v30 = vld [vmem:[%s834_s3] sm:$0xff]  ;;  %v490_v33 = vpack.c.bf16 %v489_v29, %v489_v29  ;;  %v725_v34 = vmov 0   ;;  %v435_v48 = vld [vmem:[%s833_s2 + $0x8] sm:$0xff] }
   0xd   : > { %s332_s10 = scalar_lea.vmem %s832_s1, %s695_s29  ;;  %s327_s14 = scalar_lea.vmem %s831_s0, %s782_s11  ;;  %709 = vset.pattern.permute.xlu1 %v725_v34  ;;  %710 = vset.pattern.permute.xlu2 %v725_v34  ;;  %v493_v37 = vld [vmem:[%s836_s5] sm:$0xff] }
   0xe   : > { %v349_v0 = vld [vmem:[%s332_s10] sm:$0xff]  ;;  %v350_v1 = vld [vmem:[%s332_s10 + $0x8] sm:$0xff]  ;;  %448 = vperm.xlu2 %710, %v440_v31   ;;  %711 = vset.pattern.permute.xlu0 %v725_v34  ;;  %s347_s30 = scalar_lea.vmem %s839_s8, %s782_s11  ;;  %s337_s12 = scalar_lea.vmem %s837_s6, %s782_s11 }
   0xf   : > { %v351_v2 = vadd.f32 %v350_v1, %v349_v0  ;;  %v364_v14 = vld [vmem:[%s327_s14] sm:$0xff]  ;;  %v491_v25 = vpack.c.bf16 %v349_v0, %v349_v0  ;;  %v492_v26 = vpack.c.bf16 %v350_v1, %v350_v1  ;;  %s342_s15 = scalar_lea.vmem %s838_s7, %s782_s11 }
  0x10   : > { %v434_v47 = vld [vmem:[%s833_s2] sm:$0xff] }
  0x11   : > { %352 = vadd.xlane.f32.xlu0 %v351_v2  ;;  %v503_v27 = vsel %vm454_vm2, %v491_v25, 0  ;;  %v506_v28 = vsel %vm454_vm2, %v492_v26, 0  ;;  %v436_v53 = vpack.c.bf16 %v435_v48, %v434_v47 }
  0x12   : > { %v713_v4 = vpop.eup %712 }
  0x13   : > { %v355_v5 = vmul.f32 256.0, %v713_v4  ;;  %vm359_vm0 = vweird.f32 %v713_v4 }
  0x15   : > { %v356_v6 = vsub.f32 1.0, %v355_v5 }
  0x16   : > { %496 = vperm.xlu2 %710, %v493_v37  }
  0x17   : > { %v357_v7 = vmul.f32 %v713_v4, %v356_v6 }
  0x19   : > { %v358_v8 = vadd.f32 %v713_v4, %v357_v7 }
  0x1b   : > { %v360_v9 = vsel %vm359_vm0, %v713_v4, %v358_v8 }
  0x68   : > { %v449_v54 = vpop.permute.xlu2 %448 }
  0x70   : > { %v497_v55 = vpop.permute.xlu2 %496 }
  0x84   : > { %v353_v10 = vpop.xlane.xlu0 %352 }
  0x85   : > { %v361_v11 = vmul.f32 %v360_v9, %v353_v10 }
  0x87   : > { %v362_v12 = vsub.f32 %v349_v0, %v361_v11  ;;  %v363_v13 = vsub.f32 %v350_v1, %v361_v11 }
  0x89   : > { %384 = vmatpush.msra.mxu0 %v362_v12  ;;  %404 = vmatpush.msra.mxu1 %v363_v13 }
  0x8a   : > { %687 = vmatmul.msk.f32.vlgmr.msra.gmra.mxu0 %vm365_vm1, %v364_v14  ;;  %688 = vmatmul.msk.f32.vlgmr.msra.gmra.mxu1 %vm365_vm1, %v364_v14 }
  0x8b   : > { %515 = vmatpush.bf16.msrb.mxu0 %v503_v27  ;;  %528 = vmatpush.bf16.msrb.mxu1 %v506_v28 }
  0x92   : > { %691 = vmatmul.msk.bf16.vlgmr.msrb.gmra.mxu0 %vm365_vm1, %v490_v33  ;;  %692 = vmatmul.msk.bf16.vlgmr.msrb.gmra.mxu1 %vm365_vm1, %v490_v33 }
 0x107   : > { %v386_v15 = vpop.f32.mrf.mxu0  ;;  %v406_v16 = vpop.f32.mrf.mxu1 }
 0x108   : > { %v409_v17 = vadd.f32 %v406_v16, %v386_v15 }
 0x10a   : > { %410 = vadd.xlane.f32.xlu0 %v409_v17 }
 0x10f   : > { %v517_v56 = vpop.f32.mrf.mxu0  ;;  %v530_v57 = vpop.f32.mrf.mxu1 }
 0x110   : > { %v518_v58 = vadd.f32 %v517_v56, %v497_v55  ;;  %v531_v59 = vadd.f32 %v530_v57, %v497_v55 }
 0x112   : > { %v538_v60 = vpack.c.bf16 %v531_v59, %v518_v58 }
 0x114   : > { %539 = vst [vmem:[%s347_s30] sm:$0xff] %v538_v60 }
 0x117   : > { %v519_v61 = vpop.f32.mrf.mxu0  ;;  %v532_v62 = vpop.f32.mrf.mxu1 }
 0x17d   : > { %v411_v18 = vpop.xlane.xlu0 %410 }
 0x17e   : > { %v412_v19 = vmul.f32 %v411_v18, %v360_v9 }
 0x180   : > { %v413_v20 = vsub.f32 %v386_v15, %v412_v19  ;;  %v414_v21 = vsub.f32 %v406_v16, %v412_v19 }
 0x182   : > { %v415_v22 = vmul.f32 %v413_v20, %v413_v20  ;;  %v416_v23 = vmul.f32 %v414_v21, %v414_v21 }
 0x184   : > { %v417_v24 = vadd.f32 %v416_v23, %v415_v22 }
 0x186   : > { %418 = vadd.xlane.f32.xlu1 %v417_v24 }
 0x19f   : > { %443 = vperm.xlu1 %709, %v439_v30  }
 0x1f9   : > { %v419_v32 = vpop.xlane.xlu1 %418 }
 0x1fa   : > { %v420_v35 = vmul.f32 0.003921569, %v419_v32 }
 0x1fc   : > { %v421_v36 = vadd.f32 1e-05, %v420_v35 }
 0x1fe   : > { %714 = vrsqrt.f32 %v421_v36  ;;  %vm428_vm4 = vweird.f32 %v421_v36 }
 0x204   : > { %v715_v38 = vpop.eup %714 }
 0x205   : > { %v423_v39 = vmul.f32 %v715_v38, %v421_v36  ;;  %vm429_vm3 = vweird.f32 %v715_v38 }
 0x206   : > { %vm430_vm5 = vmor %vm428_vm4, %vm429_vm3 }
 0x207   : > { %v424_v40 = vmul.f32 %v715_v38, %v423_v39 }
 0x209   : > { %v425_v41 = vmul.f32 0.5, %v424_v40 }
 0x20b   : > { %v426_v42 = vsub.f32 1.5, %v425_v41 }
 0x20d   : > { %v427_v43 = vmul.f32 %v715_v38, %v426_v42 }
 0x20f   : > { %v431_v44 = vsel %vm430_vm5, %v715_v38, %v427_v43 }
 0x210   : > { %v432_v45 = vmul.f32 %v431_v44, %v413_v20  ;;  %v433_v46 = vmul.f32 %v431_v44, %v414_v21 }
 0x211   : > { %v444_v63 = vpop.permute.xlu1 %443 }
 0x212   : > { %v437_v49 = vpack.c.bf16 %v432_v45, %v432_v45  ;;  %v438_v50 = vpack.c.bf16 %v433_v46, %v433_v46 }
 0x214   : > { %v456_v51 = vsel %vm454_vm2, %v437_v49, 0  ;;  %v459_v52 = vsel %vm454_vm2, %v438_v50, 0 }
 0x215   : > { %468 = vmatpush.bf16.msra.mxu2 %v456_v51  ;;  %482 = vmatpush.bf16.msra.mxu3 %v459_v52 }
 0x218   : > { %689 = vmatmul.msk.bf16.vlgmr.msra.gmra.mxu2 %vm365_vm1, %v436_v53  ;;  %690 = vmatmul.msk.bf16.vlgmr.msra.gmra.mxu3 %vm365_vm1, %v436_v53 }
 0x29b   : > { %v470_v0 = vpop.f32.mrf.mxu2  ;;  %v484_v1 = vpop.f32.mrf.mxu3 }
 0x29c   : > { %v471_v2 = vadd.f32 %v470_v0, %v444_v63  ;;  %v485_v3 = vadd.f32 %v484_v1, %v444_v63 }
 0x29e   : > { %v534_v4 = vpack.c.bf16 %v485_v3, %v471_v2 }
 0x2a0   : > { %535 = vst [vmem:[%s337_s12] sm:$0xff] %v534_v4 }
 0x2a3   : > { %v472_v5 = vpop.f32.mrf.mxu2  ;;  %v486_v6 = vpop.f32.mrf.mxu3 }
 0x2a4   : > { %v473_v7 = vadd.f32 %v472_v5, %v449_v54  ;;  %v487_v8 = vadd.f32 %v486_v6, %v449_v54 }
 0x2a6   : > { %v536_v9 = vpack.c.bf16 %v487_v8, %v473_v7 }
 0x2a8   : > { %537 = vst [vmem:[%s342_s15] sm:$0xff] %v536_v9 }
 0x2a9 PF: > { %s19_s27 = sadd.s32 1, %s722_s27  }
 0x2aa   : > { %p16_p4 = scmp.ge.s32.totalorder %s19_s27, 4  }
 0x2ac   :  { %18 = sbr.rel (!%p16_p4) target bundleno = 1 (0x1), region = 101 }

// kernel: content_sa_forward.5
= control target key start
LH: loop header
LB: loop body
LE: loop exit
PB: predicated region body
PF: predicated region fallthrough
CT: control target
= control target key end

     0   :  { %s1729_s21 = smov 0   ;;  %s1731_s22 = smov 0   ;;  %s2250_s0 = inlined_call_operand.vmem [shape: bf16[2,8,256], index: 0, kind: input, shape index: {}]   ;;  %s2251_s1 = inlined_call_operand.vmem [shape: bf16[2,8,256], index: 1, kind: input, shape index: {}]   ;;  %s2252_s2 = inlined_call_operand.vmem [shape: bf16[2,8,256], index: 2, kind: input, shape index: {}]   ;;  %s2253_s3 = inlined_call_operand.vmem [shape: f32[2,8,256], index: 3, kind: input, shape index: {}]   ;;  %s2254_s4 = inlined_call_operand.vmem [shape: f32[8,8], index: 4, kind: input, shape index: {}]   ;;  %s2255_s5 = inlined_call_operand.vmem [shape: f32[8,1], index: 5, kind: input, shape index: {}]   ;;  %s2256_s6 = inlined_call_operand.vmem [shape: f32[2,8,256], index: 6, kind: output, shape index: {}]  }
   0x1   :  { %s1733_s23 = smov 0   ;;  %s1735_s24 = smov 0  }
   0x2   :  { %s1737_s25 = smov 0   ;;  %s1739_s26 = smov 0  }
   0x3   :  { %s1741_s27 = smov 0  }
   0x4 LB: > { %s28_s28 = sadd.s32 1, %s1676_s24  ;;  %s31_s29 = sadd.s32 1, %s1680_s25  ;;  %s1688_s27 = sphi %s1741_s27, %s16_s27   ;;  %s1684_s26 = sphi %s1739_s26, %s2266_s26   ;;  %s1680_s25 = sphi %s1737_s25, %s2265_s25   ;;  %s1676_s24 = sphi %s1735_s24, %s2264_s24   ;;  %s1672_s23 = sphi %s1733_s23, %s2263_s23   ;;  %s1668_s22 = sphi %s1731_s22, %s2262_s22   ;;  %s1664_s21 = sphi %s1729_s21, %s2261_s21  }
   0x5   : > { %p29_p0 = scmp.ge.s32.totalorder %s28_s28, 2  ;;  %p1446_p1 = scmp.ge.s32.totalorder %s1688_s27, 1 }
   0x6   : > { %p283_p2 = scmp.lt.s32.totalorder %s1688_s27, 9  ;;  %s35_s30 = sadd.s32 1, %s1684_s26 }
   0x7   : > { %s2268_s28 = smov (%p29_p0, %s28_s28), 0  ;;  %s2270_s29 = smov (!%p29_p0, %s31_s29), %s1680_s25 }
   0x8   : > { %p284_p3 = pnand %p1446_p1, %p283_p2  ;;  %p33_p4 = scmp.ge.s32.totalorder %s2270_s29, 2 }
   0x9   : > { %p343_p6 = scmp.lt.s32.totalorder (!%p284_p3), %s1672_s23, 1  ;;  %p345_p7 = scmp.lt.s32.totalorder (!%p284_p3), %s1668_s22, 1 }
   0xa   : > { %s2272_s29 = smov (%p33_p4, %s2270_s29), 0  ;;  %s2274_s30 = smov (!%p33_p4, %s35_s30), %s1684_s26 }
   0xb   : > { %2257 = sst [smem:[#allocation5_spill]] %s2272_s29  ;;  %p37_p5 = scmp.ge.s32.totalorder %s2274_s30, 2 }
   0xc   : > { %287 = sbr.rel (%p284_p3) target bundleno = 1229 (0x4cd), region = 44  ;;  %p353_p8 = scmp.lt.s32.totalorder (!%p284_p3), %s1664_s21, 1 }
   0xd   : > { %s2276_s30 = smov (%p37_p5, %s2274_s30), 0  ;;  %p1457_p9 = scmp.ne.s32.totalorder (!%p284_p3), %s1664_s21, 0 }
   0xe   : > { %2258 = sst [smem:[#allocation6_spill]] %s2276_s30 }
  0x11   : > { %s2278_s23 = smov (!%p343_p6, %s1672_s23), 1  ;;  %s2280_s22 = smov (!%p345_p7, %s1668_s22), 1 }
  0x12   : > { %s1447_s7 = sshll.u32 %s2278_s23, 1 }
  0x13   : > { %s348_s8 = sadd.s32 %s1447_s7, %s2280_s22 }
  0x14   : > { %s1448_s9 = sshll.u32 %s348_s8, 2  ;;  %s1454_s10 = sshll.u32 %s348_s8, 3 }
  0x15   : > { %s1777_s13 = scalar_lea.vmem %s2250_s0, %s1448_s9  ;;  %s1782_s16 = scalar_lea.vmem %s2253_s3, %s1454_s10 }
  0x16   : > { %s354_s17 = scalar_select %p353_p8, %s1664_s21, 1 }
  0x17   : > { %s1788_s20 = scalar_lea.vmem %s2256_s6, %s1454_s10  ;;  %387 = sbr.rel (%p1457_p9) target bundleno = 77 (0x4d), region = 48 }
  0x18   : > { %s356_s23 = sadd.s32 %s1447_s7, %s354_s17 }
  0x19   : > { %s1450_s22 = sshll.u32 %s356_s23, 2 }
  0x1a   : > { %s1793_s29 = scalar_lea.vmem %s2251_s1, %s1450_s22  ;;  %s1798_s12 = scalar_lea.vmem %s2252_s2, %s1450_s22 }
  0x1c   : > { %vm388_vm0 = vcmask 7168   ;;  %v1690_v0 = vmov -inf   ;;  %v1691_v1 = vmov 0.0   ;;  %vm421_vm1 = vcmask 64512  }
  0x1d   : > { %389 = vst.msk [vmem:[#allocation2] sm:$0xff] %vm388_vm0, %v1690_v0 }
  0x1e   : > { %390 = vst.msk [vmem:[#allocation2 + $0x8] sm:$0xff] %vm388_vm0, %v1690_v0 }
  0x1f   : > { %391 = vst.msk [vmem:[#allocation2 + $0x10] sm:$0xff] %vm388_vm0, %v1690_v0 }
  0x20   : > { %392 = vst.msk [vmem:[#allocation2 + $0x18] sm:$0xff] %vm388_vm0, %v1690_v0 }
  0x21   : > { %393 = vst.msk [vmem:[#allocation2 + $0x20] sm:$0xff] %vm388_vm0, %v1690_v0 }
  0x22   : > { %394 = vst.msk [vmem:[#allocation2 + $0x28] sm:$0xff] %vm388_vm0, %v1690_v0 }
  0x23   : > { %395 = vst.msk [vmem:[#allocation2 + $0x30] sm:$0xff] %vm388_vm0, %v1690_v0 }
  0x24   : > { %396 = vst.msk [vmem:[#allocation2 + $0x38] sm:$0xff] %vm388_vm0, %v1690_v0 }
  0x25   : > { %397 = vst.msk [vmem:[#allocation2 + $0x40] sm:$0xff] %vm388_vm0, %v1690_v0 }
  0x26   : > { %398 = vst.msk [vmem:[#allocation2 + $0x48] sm:$0xff] %vm388_vm0, %v1690_v0 }
  0x27   : > { %399 = vst.msk [vmem:[#allocation2 + $0x50] sm:$0xff] %vm388_vm0, %v1690_v0 }
  0x28   : > { %400 = vst.msk [vmem:[#allocation2 + $0x58] sm:$0xff] %vm388_vm0, %v1690_v0 }
  0x29   : > { %401 = vst.msk [vmem:[#allocation2 + $0x60] sm:$0xff] %vm388_vm0, %v1690_v0 }
  0x2a   : > { %402 = vst.msk [vmem:[#allocation2 + $0x68] sm:$0xff] %vm388_vm0, %v1690_v0 }
  0x2b   : > { %403 = vst.msk [vmem:[#allocation2 + $0x70] sm:$0xff] %vm388_vm0, %v1690_v0 }
  0x2c   : > { %404 = vst.msk [vmem:[#allocation2 + $0x78] sm:$0xff] %vm388_vm0, %v1690_v0 }
  0x2d   : > { %405 = vst.msk [vmem:[#allocation3] sm:$0xff] %vm388_vm0, %v1691_v1 }
  0x2e   : > { %406 = vst.msk [vmem:[#allocation3 + $0x8] sm:$0xff] %vm388_vm0, %v1691_v1 }
  0x2f   : > { %407 = vst.msk [vmem:[#allocation3 + $0x10] sm:$0xff] %vm388_vm0, %v1691_v1 }
  0x30   : > { %408 = vst.msk [vmem:[#allocation3 + $0x18] sm:$0xff] %vm388_vm0, %v1691_v1 }
  0x31   : > { %409 = vst.msk [vmem:[#allocation3 + $0x20] sm:$0xff] %vm388_vm0, %v1691_v1 }
  0x32   : > { %410 = vst.msk [vmem:[#allocation3 + $0x28] sm:$0xff] %vm388_vm0, %v1691_v1 }
  0x33   : > { %411 = vst.msk [vmem:[#allocation3 + $0x30] sm:$0xff] %vm388_vm0, %v1691_v1 }
  0x34   : > { %412 = vst.msk [vmem:[#allocation3 + $0x38] sm:$0xff] %vm388_vm0, %v1691_v1 }
  0x35   : > { %413 = vst.msk [vmem:[#allocation3 + $0x40] sm:$0xff] %vm388_vm0, %v1691_v1 }
  0x36   : > { %414 = vst.msk [vmem:[#allocation3 + $0x48] sm:$0xff] %vm388_vm0, %v1691_v1 }
  0x37   : > { %415 = vst.msk [vmem:[#allocation3 + $0x50] sm:$0xff] %vm388_vm0, %v1691_v1 }
  0x38   : > { %416 = vst.msk [vmem:[#allocation3 + $0x58] sm:$0xff] %vm388_vm0, %v1691_v1 }
  0x39   : > { %417 = vst.msk [vmem:[#allocation3 + $0x60] sm:$0xff] %vm388_vm0, %v1691_v1 }
  0x3a   : > { %418 = vst.msk [vmem:[#allocation3 + $0x68] sm:$0xff] %vm388_vm0, %v1691_v1 }
  0x3b   : > { %419 = vst.msk [vmem:[#allocation3 + $0x70] sm:$0xff] %vm388_vm0, %v1691_v1 }
  0x3c   : > { %420 = vst.msk [vmem:[#allocation3 + $0x78] sm:$0xff] %vm388_vm0, %v1691_v1 }
  0x3d   : > { %422 = vst.msk [vmem:[#allocation4] sm:$0xff] %vm421_vm1, %v1691_v1 }
  0x3e   : > { %423 = vst.msk [vmem:[#allocation4 + $0x8] sm:$0xff] %vm421_vm1, %v1691_v1 }
  0x3f   : > { %424 = vst.msk [vmem:[#allocation4 + $0x10] sm:$0xff] %vm421_vm1, %v1691_v1 }
  0x40   : > { %425 = vst.msk [vmem:[#allocation4 + $0x18] sm:$0xff] %vm421_vm1, %v1691_v1 }
  0x41   : > { %426 = vst.msk [vmem:[#allocation4 + $0x20] sm:$0xff] %vm421_vm1, %v1691_v1 }
  0x42   : > { %427 = vst.msk [vmem:[#allocation4 + $0x28] sm:$0xff] %vm421_vm1, %v1691_v1 }
  0x43   : > { %428 = vst.msk [vmem:[#allocation4 + $0x30] sm:$0xff] %vm421_vm1, %v1691_v1 }
  0x44   : > { %429 = vst.msk [vmem:[#allocation4 + $0x38] sm:$0xff] %vm421_vm1, %v1691_v1 }
  0x45   : > { %430 = vst.msk [vmem:[#allocation4 + $0x40] sm:$0xff] %vm421_vm1, %v1691_v1 }
  0x46   : > { %431 = vst.msk [vmem:[#allocation4 + $0x48] sm:$0xff] %vm421_vm1, %v1691_v1 }
  0x47   : > { %432 = vst.msk [vmem:[#allocation4 + $0x50] sm:$0xff] %vm421_vm1, %v1691_v1 }
  0x48   : > { %433 = vst.msk [vmem:[#allocation4 + $0x58] sm:$0xff] %vm421_vm1, %v1691_v1 }
  0x49   : > { %434 = vst.msk [vmem:[#allocation4 + $0x60] sm:$0xff] %vm421_vm1, %v1691_v1 }
  0x4a   : > { %435 = vst.msk [vmem:[#allocation4 + $0x68] sm:$0xff] %vm421_vm1, %v1691_v1 }
  0x4b   : > { %436 = vst.msk [vmem:[#allocation4 + $0x70] sm:$0xff] %vm421_vm1, %v1691_v1 }
  0x4c   : > { %437 = vst.msk [vmem:[#allocation4 + $0x78] sm:$0xff] %vm421_vm1, %v1691_v1 }
  0x4d PF: > { %v438_v2 = vld [vmem:[%s1777_s13] sm:$0xf]  ;;  %vm482_vm2 = vcmask 1043456   ;;  %vm457_vm3 = vcmask 64512   ;;  %v1692_v27 = vmov 0   ;;  %vm855_vm4 = vcmask 7168  }
  0x4e   : > { %v439_v3 = vld [vmem:[%s1793_s29] sm:$0xf]  ;;  %441 = vxpose.xlu0.c.b16.start.end [1/1] (short) %v438_v2, 128  ;;  %1532 = vset.pattern.permute.xlu2 %v1692_v27  ;;  %v1913_v33 = vld [vmem:[#allocation2 + $0x8] sm:$0xff]  ;;  %v537_v38 = vld [vmem:[#allocation2 + $0x10] sm:$0xff]  ;;  %p1466_p10 = scmp.ne.s32.totalorder %s1664_s21, 1 }
  0x4f   : > { %v484_v4 = vsel %vm482_vm2, %v439_v3, 0  ;;  %1533 = vset.pattern.permute.xlu1 %v1692_v27  ;;  %v1901_v28 = vld [vmem:[#allocation2] sm:$0xff]  ;;  %v1926_v43 = vld [vmem:[#allocation2 + $0x18] sm:$0xff]  ;;  %v1949_v52 = vld [vmem:[#allocation2 + $0x28] sm:$0xff] }
  0x50   : > { %493 = vmatpush.bf16.msra.mxu0 %v484_v4  ;;  %1470 = vmatpush.bf16.msra.mxu3 %v484_v4  ;;  %v1939_v48 = vld [vmem:[#allocation2 + $0x20] sm:$0xff]  ;;  %v1958_v56 = vld [vmem:[#allocation2 + $0x30] sm:$0xff]  ;;  %v1967_v60 = vld [vmem:[#allocation2 + $0x38] sm:$0xff] }
  0x51   : > { %v1976_v0 = vld [vmem:[#allocation2 + $0x40] sm:$0xff]  ;;  %v544_v4 = vld [vmem:[#allocation2 + $0x48] sm:$0xff] }
  0xb5   : > { %1534 = vset.pattern.permute.xlu0 %v1692_v27 }
  0xfa   : > { %v449_v5 = vpop.trf.xlu0 }
  0xfb   : > { %1458 = vmatmul.msk.bf16.vlgmr.msra.gmra.mxu0 %vm457_vm3, %v449_v5 }
 0x10a   : > { %v450_v6 = vpop.trf.xlu0 }
 0x10b   : > { %1459 = vmatmul.msk.bf16.gmra.mxu0 %vm457_vm3, %v450_v6 }
 0x11a   : > { %v451_v7 = vpop.trf.xlu0 }
 0x11b   : > { %1460 = vmatmul.msk.bf16.gmra.mxu0 %vm457_vm3, %v451_v7 }
 0x12a   : > { %v452_v8 = vpop.trf.xlu0 }
 0x12b   : > { %1461 = vmatmul.msk.bf16.gmra.mxu0 %vm457_vm3, %v452_v8 }
 0x13a   : > { %v453_v9 = vpop.trf.xlu0 }
 0x13b   : > { %1462 = vmatmul.msk.bf16.gmra.mxu0 %vm457_vm3, %v453_v9  ;;  %v1989_v9 = vld [vmem:[#allocation2 + $0x50] sm:$0xff] }
 0x14a   : > { %v454_v10 = vpop.trf.xlu0 }
 0x14b   : > { %1463 = vmatmul.msk.bf16.vlgmr.msra.gmra.mxu3 %vm457_vm3, %v454_v10 }
 0x15a   : > { %v455_v11 = vpop.trf.xlu0 }
 0x15b   : > { %1464 = vmatmul.msk.bf16.gmra.mxu3 %vm457_vm3, %v455_v11 }
 0x16a   : > { %v456_v12 = vpop.trf.xlu0 }
 0x16b   : > { %1465 = vmatmul.msk.bf16.gmra.mxu3 %vm457_vm3, %v456_v12 }
 0x178   : > { %v1859_v13 = vpop.f32.mrf.mxu0 }
 0x179   : > { %551 = vmax.xlane.f32.xlu0 %v1859_v13 }
 0x180   : > { %v1862_v14 = vpop.f32.mrf.mxu0 }
 0x181   : > { %553 = vmax.xlane.f32.xlu1 %v1862_v14 }
 0x188   : > { %v1865_v15 = vpop.f32.mrf.mxu0 }
 0x189   : > { %555 = vmax.xlane.f32.xlu1 %v1865_v15 }
 0x190   : > { %v1868_v16 = vpop.f32.mrf.mxu0 }
 0x191   : > { %557 = vmax.xlane.f32.xlu2 %v1868_v16 }
 0x198   : > { %v1871_v17 = vpop.f32.mrf.mxu0 }
 0x199   : > { %559 = vmax.xlane.f32.xlu2 %v1871_v17 }
 0x1a0   : > { %v1874_v18 = vpop.f32.mrf.mxu0 }
 0x1a1   : > { %561 = vmax.xlane.f32.xlu1 %v1874_v18 }
 0x1a8   : > { %v1877_v19 = vpop.f32.mrf.mxu0 }
 0x1a9   : > { %563 = vmax.xlane.f32.xlu2 %v1877_v19 }
 0x1b0   : > { %v1880_v20 = vpop.f32.mrf.mxu0 }
 0x1b1   : > { %565 = vmax.xlane.f32.xlu1 %v1880_v20 }
 0x1b8   : > { %v1883_v21 = vpop.f32.mrf.mxu0 }
 0x1b9   : > { %567 = vmax.xlane.f32.xlu2 %v1883_v21 }
 0x1c0   : > { %v1886_v22 = vpop.f32.mrf.mxu0 }
 0x1c1   : > { %569 = vmax.xlane.f32.xlu1 %v1886_v22 }
 0x1ce   : > { %v1889_v23 = vpop.f32.mrf.mxu3 }
 0x1cf   : > { %571 = vmax.xlane.f32.xlu2 %v1889_v23 }
 0x1d6   : > { %v1892_v24 = vpop.f32.mrf.mxu3 }
 0x1d7   : > { %573 = vmax.xlane.f32.xlu1 %v1892_v24 }
 0x1de   : > { %v1895_v25 = vpop.f32.mrf.mxu3 }
 0x1df   : > { %575 = vmax.xlane.f32.xlu2 %v1895_v25 }
 0x1e6   : > { %v1898_v26 = vpop.f32.mrf.mxu3 }
 0x1e7   : > { %577 = vmax.xlane.f32.xlu1 %v1898_v26 }
 0x1ec   : > { %v552_v29 = vpop.xlane.xlu0 %551 }
 0x1ed   : > { %v1904_v30 = vmax.f32 %v1901_v28, %v552_v29  ;;  %v2002_v29 = vld [vmem:[#allocation2 + $0x58] sm:$0xff] }
 0x1ee   : > { %v1906_v31 = vpop.f32.mrf.mxu3 }
 0x1ef   : > { %v599_v32 = vsub.f32 %v1901_v28, %v1904_v30  ;;  %1073 = vst.msk [vmem:[#allocation2] sm:$0xff] %vm855_vm4, %v1904_v30  ;;  %579 = vmax.xlane.f32.xlu2 %v1906_v31 }
 0x1f4   : > { %v554_v34 = vpop.xlane.xlu1 %553 }
 0x1f5   : > { %v1916_v35 = vmax.f32 %v1913_v33, %v554_v34 }
 0x1f6   : > { %v1918_v36 = vpop.f32.mrf.mxu3 }
 0x1f7   : > { %v600_v37 = vsub.f32 %v1913_v33, %v1916_v35  ;;  %1074 = vst.msk [vmem:[#allocation2 + $0x8] sm:$0xff] %vm855_vm4, %v1916_v35  ;;  %581 = vmax.xlane.f32.xlu1 %v1918_v36  ;;  %v615_v33 = vmul.f32 1.442695, %v599_v32 }
 0x1fc   : > { %v556_v39 = vpop.xlane.xlu1 %555 }
 0x1fd   : > { %v585_v40 = vmax.f32 %v537_v38, %v556_v39  ;;  %v547_v39 = vld [vmem:[#allocation2 + $0x60] sm:$0xff] }
 0x1ff   : > { %v601_v41 = vsub.f32 %v537_v38, %v585_v40  ;;  %1075 = vst.msk [vmem:[#allocation2 + $0x10] sm:$0xff] %vm855_vm4, %v585_v40 }
 0x201   : > { %v619_v42 = vmul.f32 1.442695, %v601_v41 }
 0x203   : > { %1535 = vpow2.f32 %v619_v42 }
 0x204   : > { %v558_v44 = vpop.xlane.xlu2 %557 }
 0x205   : > { %v1929_v45 = vmax.f32 %v1926_v43, %v558_v44 }
 0x207   : > { %v602_v46 = vsub.f32 %v1926_v43, %v1929_v45  ;;  %1076 = vst.msk [vmem:[#allocation2 + $0x18] sm:$0xff] %vm855_vm4, %v1929_v45  ;;  %649 = vperm.xlu2 %1532, %v1904_v30  }
 0x209   : > { %v1936_v47 = vpop.eup %1535  ;;  %v621_v28 = vmul.f32 1.442695, %v602_v46 }
 0x20a   : > { %900 = vperm.xlu0 %1534, %v1936_v47  }
 0x20c   : > { %v560_v49 = vpop.xlane.xlu2 %559 }
 0x20d   : > { %v1942_v50 = vmax.f32 %v1939_v48, %v560_v49  ;;  %v2013_v49 = vld [vmem:[#allocation2 + $0x68] sm:$0xff] }
 0x20f   : > { %v603_v51 = vsub.f32 %v1939_v48, %v1942_v50  ;;  %1077 = vst.msk [vmem:[#allocation2 + $0x20] sm:$0xff] %vm855_vm4, %v1942_v50  ;;  %659 = vperm.xlu2 %1532, %v585_v40  }
 0x210   : > { %654 = vperm.xlu1 %1533, %v1916_v35  }
 0x211   : > { %v623_v35 = vmul.f32 1.442695, %v603_v51 }
 0x214   : > { %v562_v53 = vpop.xlane.xlu1 %561 }
 0x215   : > { %v1952_v54 = vmax.f32 %v1949_v52, %v562_v53 }
 0x217   : > { %v604_v55 = vsub.f32 %v1949_v52, %v1952_v54  ;;  %1078 = vst.msk [vmem:[#allocation2 + $0x28] sm:$0xff] %vm855_vm4, %v1952_v54 }
 0x219   : > { %v625_v43 = vmul.f32 1.442695, %v604_v55 }
 0x21c   : > { %v564_v57 = vpop.xlane.xlu2 %563 }
 0x21d   : > { %v1961_v58 = vmax.f32 %v1958_v56, %v564_v57 }
 0x21f   : > { %v605_v59 = vsub.f32 %v1958_v56, %v1961_v58  ;;  %1079 = vst.msk [vmem:[#allocation2 + $0x30] sm:$0xff] %vm855_vm4, %v1961_v58 }
 0x221   : > { %v627_v30 = vmul.f32 1.442695, %v605_v59 }
 0x224   : > { %v566_v61 = vpop.xlane.xlu1 %565 }
 0x225   : > { %v1970_v62 = vmax.f32 %v1967_v60, %v566_v61 }
 0x227   : > { %v606_v63 = vsub.f32 %v1967_v60, %v1970_v62  ;;  %1080 = vst.msk [vmem:[#allocation2 + $0x38] sm:$0xff] %vm855_vm4, %v1970_v62 }
 0x22c   : > { %v568_v1 = vpop.xlane.xlu2 %567 }
 0x22d   : > { %v1979_v2 = vmax.f32 %v1976_v0, %v568_v1 }
 0x22f   : > { %v607_v3 = vsub.f32 %v1976_v0, %v1979_v2  ;;  %1081 = vst.msk [vmem:[#allocation2 + $0x40] sm:$0xff] %vm855_vm4, %v1979_v2  ;;  %689 = vperm.xlu2 %1532, %v1979_v2  }
 0x234   : > { %v570_v5 = vpop.xlane.xlu1 %569 }
 0x235   : > { %v592_v6 = vmax.f32 %v544_v4, %v570_v5  ;;  %v617_v5 = vmul.f32 1.442695, %v600_v37 }
 0x237   : > { %v608_v7 = vsub.f32 %v544_v4, %v592_v6  ;;  %1082 = vst.msk [vmem:[#allocation2 + $0x48] sm:$0xff] %vm855_vm4, %v592_v6  ;;  %694 = vperm.xlu1 %1533, %v592_v6   ;;  %664 = vperm.xlu2 %1532, %v1929_v45   ;;  %v2026_v4 = vld [vmem:[#allocation2 + $0x70] sm:$0xff]  ;;  %v631_v45 = vmul.f32 1.442695, %v607_v3 }
 0x239   : > { %v633_v8 = vmul.f32 1.442695, %v608_v7 }
 0x23b   : > { %1537 = vpow2.f32 %v633_v8 }
 0x23f   : > { %669 = vperm.xlu1 %1533, %v1942_v50  }
 0x241   : > { %v1991_v10 = vpop.eup %1537 }
 0x242   : > { %935 = vperm.xlu0 %1534, %v1991_v10   ;;  %v572_v11 = vpop.xlane.xlu2 %571 }
 0x243   : > { %v1995_v12 = vmax.f32 %v1989_v9, %v572_v11  ;;  %v440_v11 = vld [vmem:[%s1798_s12] sm:$0xf] }
 0x244   : > { %999 = vmatpush.bf16.xpose.msra.mxu1 %v440_v11  ;;  %1471 = vmatpush.bf16.xpose.msra.mxu2 %v440_v11 }
 0x245   : > { %v609_v27 = vsub.f32 %v1989_v9, %v1995_v12  ;;  %1083 = vst.msk [vmem:[#allocation2 + $0x50] sm:$0xff] %vm855_vm4, %v1995_v12 }
 0x247   : > { %699 = vperm.xlu1 %1533, %v1995_v12  }
 0x24a   : > { %v574_v34 = vpop.xlane.xlu1 %573 }
 0x24b   : > { %v2005_v38 = vmax.f32 %v2002_v29, %v574_v34  ;;  %v2041_v34 = vld [vmem:[#allocation2 + $0x78] sm:$0xff] }
 0x24d   : > { %1084 = vst.msk [vmem:[#allocation2 + $0x58] sm:$0xff] %vm855_vm4, %v2005_v38  ;;  %704 = vperm.xlu2 %1532, %v2005_v38   ;;  %v610_v56 = vsub.f32 %v2002_v29, %v2005_v38 }
 0x24f   : > { %679 = vperm.xlu1 %1533, %v1961_v58   ;;  %v637_v55 = vmul.f32 1.442695, %v610_v56 }
 0x252   : > { %v576_v40 = vpop.xlane.xlu2 %575 }
 0x253   : > { %v595_v41 = vmax.f32 %v547_v39, %v576_v40 }
 0x255   : > { %v611_v42 = vsub.f32 %v547_v39, %v595_v41  ;;  %1085 = vst.msk [vmem:[#allocation2 + $0x60] sm:$0xff] %vm855_vm4, %v595_v41  ;;  %674 = vperm.xlu2 %1532, %v1952_v54   ;;  %v629_v54 = vmul.f32 1.442695, %v606_v63 }
 0x257   : > { %v639_v44 = vmul.f32 1.442695, %v611_v42 }
 0x259   : > { %1539 = vpow2.f32 %v639_v44 }
 0x25a   : > { %v578_v53 = vpop.xlane.xlu1 %577  ;;  %1541 = vpow2.f32 %v617_v5 }
 0x25b   : > { %v2016_v57 = vmax.f32 %v2013_v49, %v578_v53  ;;  %1543 = vpow2.f32 %v615_v33 }
 0x25c   : > { %1545 = vpow2.f32 %v623_v35 }
 0x25d   : > { %v612_v61 = vsub.f32 %v2013_v49, %v2016_v57  ;;  %1086 = vst.msk [vmem:[#allocation2 + $0x68] sm:$0xff] %vm855_vm4, %v2016_v57  ;;  %714 = vperm.xlu1 %1533, %v2016_v57   ;;  %709 = vperm.xlu2 %1532, %v595_v41   ;;  %1547 = vpow2.f32 %v621_v28 }
 0x25e   : > { %1549 = vpow2.f32 %v627_v30 }
 0x25f   : > { %v2023_v1 = vpop.eup %1539  ;;  %1551 = vpow2.f32 %v625_v43 }
 0x260   : > { %950 = vperm.xlu0 %1534, %v2023_v1   ;;  %v2052_v40 = vpop.eup %1541  ;;  %1553 = vpow2.f32 %v631_v45 }
 0x261   : > { %v2066_v32 = vpop.eup %1543  ;;  %1555 = vpow2.f32 %v629_v54 }
 0x262   : > { %v580_v6 = vpop.xlane.xlu2 %579  ;;  %v2068_v48 = vpop.eup %1545  ;;  %1557 = vpow2.f32 %v637_v55 }
 0x263   : > { %v2032_v7 = vmax.f32 %v2026_v4, %v580_v6  ;;  %v2078_v46 = vpop.eup %1547 }
 0x264   : > { %v2080_v51 = vpop.eup %1549 }
 0x265   : > { %v613_v8 = vsub.f32 %v2026_v4, %v2032_v7  ;;  %1087 = vst.msk [vmem:[#allocation2 + $0x70] sm:$0xff] %vm855_vm4, %v2032_v7  ;;  %719 = vperm.xlu1 %1533, %v2032_v7   ;;  %684 = vperm.xlu2 %1532, %v1970_v62   ;;  %v2090_v2 = vpop.eup %1551  ;;  %v635_v62 = vmul.f32 1.442695, %v609_v27  ;;  %v873_v7 = vld [vmem:[#allocation4 + $0x8] sm:$0xff] }
 0x266   : > { %v2093_v29 = vpop.eup %1553 }
 0x267   : > { %v2097_v60 = vpop.eup %1555 }
 0x268   : > { %v2102_v63 = vpop.eup %1557 }
 0x26a   : > { %v582_v37 = vpop.xlane.xlu1 %581  ;;  %v650_v50 = vpop.permute.xlu2 %649 }
 0x26b   : > { %v2050_v39 = vmax.f32 %v2041_v34, %v582_v37  ;;  %v727_v52 = vsub.f32 %v1859_v13, %v650_v50 }
 0x26d   : > { %v614_v41 = vsub.f32 %v2041_v34, %v2050_v39  ;;  %1088 = vst.msk [vmem:[#allocation2 + $0x78] sm:$0xff] %vm855_vm4, %v2050_v39  ;;  %895 = vperm.xlu1 %1533, %v2052_v40   ;;  %724 = vperm.xlu2 %1532, %v2050_v39   ;;  %v743_v59 = vmul.f32 1.442695, %v727_v52  ;;  %v641_v39 = vmul.f32 1.442695, %v612_v61 }
 0x26f   : > { %1559 = vpow2.f32 %v743_v59 }
 0x272   : > { %v660_v58 = vpop.permute.xlu2 %659 }
 0x273   : > { %v729_v44 = vsub.f32 %v1865_v15, %v660_v58 }
 0x275   : > { %910 = vperm.xlu1 %1533, %v2068_v48   ;;  %890 = vperm.xlu2 %1532, %v2066_v32   ;;  %v747_v5 = vmul.f32 1.442695, %v729_v44 }
 0x27d   : > { %920 = vperm.xlu1 %1533, %v2080_v51   ;;  %905 = vperm.xlu2 %1532, %v2078_v46  }
 0x282   : > { %v655_v0 = vpop.permute.xlu1 %654 }
 0x283   : > { %v728_v3 = vsub.f32 %v1862_v14, %v655_v0  ;;  %v1560_v14 = vpop.eup %1559 }
 0x285   : > { %v745_v38 = vmul.f32 1.442695, %v728_v3  ;;  %930 = vperm.xlu1 %1533, %v2093_v29   ;;  %915 = vperm.xlu2 %1532, %v2090_v2  }
 0x287   : > { %1561 = vpow2.f32 %v745_v38 }
 0x288   : > { %1563 = vpow2.f32 %v635_v62 }
 0x289   : > { %v690_v13 = vpop.permute.xlu2 %689  ;;  %1565 = vpow2.f32 %v747_v5 }
 0x28a   : > { %v735_v35 = vsub.f32 %v1883_v21, %v690_v13 }
 0x28c   : > { %v759_v28 = vmul.f32 1.442695, %v735_v35 }
 0x28d   : > { %v1562_v42 = vpop.eup %1561  ;;  %945 = vperm.xlu1 %1533, %v2102_v63   ;;  %925 = vperm.xlu2 %1532, %v2097_v60  }
 0x28e   : > { %v984_v53 = vpack.c.bf16 %v1562_v42, %v1560_v14  ;;  %v2108_v33 = vpop.eup %1563 }
 0x28f   : > { %v1566_v12 = vpop.eup %1565 }
 0x290   : > { %1000 = vmatmul.bf16.vlgmr.msra.gmra.mxu1 %v984_v53 }
 0x291   : > { %v665_v6 = vpop.permute.xlu2 %664 }
 0x292   : > { %v730_v11 = vsub.f32 %v1868_v16, %v665_v6 }
 0x294   : > { %v749_v9 = vmul.f32 1.442695, %v730_v11 }
 0x295   : > { %940 = vperm.xlu2 %1532, %v2108_v33  }
 0x296   : > { %1567 = vpow2.f32 %v749_v9 }
 0x297   : > { %1569 = vpow2.f32 %v759_v28 }
 0x29c   : > { %v1568_v15 = vpop.eup %1567 }
 0x29d   : > { %v985_v27 = vpack.c.bf16 %v1568_v15, %v1566_v12  ;;  %v1570_v55 = vpop.eup %1569 }
 0x2a0   : > { %1005 = vmatmul.bf16.gmra.mxu1 %v985_v27 }
 0x2a7   : > { %v705_v37 = vpop.permute.xlu2 %704 }
 0x2a8   : > { %v738_v21 = vsub.f32 %v1892_v24, %v705_v37 }
 0x2a9   : > { %v695_v30 = vpop.permute.xlu1 %694 }
 0x2aa   : > { %v736_v50 = vsub.f32 %v1886_v22, %v695_v30  ;;  %v765_v3 = vmul.f32 1.442695, %v738_v21 }
 0x2ac   : > { %v761_v43 = vmul.f32 1.442695, %v736_v50 }
 0x2ae   : > { %1571 = vpow2.f32 %v761_v43 }
 0x2af   : > { %v675_v16 = vpop.permute.xlu2 %674 }
 0x2b0   : > { %v732_v45 = vsub.f32 %v1874_v18, %v675_v16 }
 0x2b1   : > { %v670_v56 = vpop.permute.xlu1 %669 }
 0x2b2   : > { %v753_v52 = vmul.f32 1.442695, %v732_v45  ;;  %v731_v54 = vsub.f32 %v1871_v17, %v670_v56 }
 0x2b4   : > { %v2115_v58 = vpop.eup %1571  ;;  %v751_v59 = vmul.f32 1.442695, %v731_v54  ;;  %1573 = vpow2.f32 %v753_v52  ;;  %v645_v54 = vmul.f32 1.442695, %v614_v41  ;;  %v643_v41 = vmul.f32 1.442695, %v613_v8 }
 0x2b5   : > { %v988_v0 = vpack.c.bf16 %v2115_v58, %v1570_v55 }
 0x2b6   : > { %1575 = vpow2.f32 %v751_v59 }
 0x2b7   : > { %807 = vadd.xlane.f32.xlu1 %v1560_v14  ;;  %1020 = vmatmul.bf16.vlgmr.msra.gmra.mxu2 %v988_v0  ;;  %v710_v22 = vpop.permute.xlu2 %709  ;;  %1577 = vpow2.f32 %v765_v3  ;;  %v872_v3 = vld [vmem:[#allocation4] sm:$0xff] }
 0x2b9   : > { %v700_v38 = vpop.permute.xlu1 %699 }
 0x2ba   : > { %v737_v18 = vsub.f32 %v1889_v23, %v700_v38  ;;  %v1574_v13 = vpop.eup %1573 }
 0x2bc   : > { %v1576_v62 = vpop.eup %1575  ;;  %v763_v17 = vmul.f32 1.442695, %v737_v18 }
 0x2bd   : > { %v986_v44 = vpack.c.bf16 %v1574_v13, %v1576_v62  ;;  %v1578_v11 = vpop.eup %1577 }
 0x2be   : > { %1579 = vpow2.f32 %v763_v17  ;;  %809 = vadd.xlane.f32.xlu2 %v1562_v42 }
 0x2bf   : > { %811 = vadd.xlane.f32.xlu1 %v1566_v12  ;;  %1010 = vmatmul.bf16.gmra.mxu1 %v986_v44  ;;  %v685_v24 = vpop.permute.xlu2 %684  ;;  %v874_v44 = vld [vmem:[#allocation4 + $0x10] sm:$0xff] }
 0x2c0   : > { %v734_v53 = vsub.f32 %v1880_v20, %v685_v24  ;;  %v739_v20 = vsub.f32 %v1895_v25, %v710_v22  ;;  %v901_v24 = vpop.permute.xlu0 %900 }
 0x2c1   : > { %v680_v5 = vpop.permute.xlu1 %679 }
 0x2c2   : > { %v757_v14 = vmul.f32 1.442695, %v734_v53  ;;  %v733_v6 = vsub.f32 %v1877_v19, %v680_v5  ;;  %v767_v19 = vmul.f32 1.442695, %v739_v20  ;;  %v970_v53 = vmul.f32 %v901_v24, %v874_v44 }
 0x2c4   : > { %v1580_v9 = vpop.eup %1579  ;;  %v755_v27 = vmul.f32 1.442695, %v733_v6  ;;  %1581 = vpow2.f32 %v757_v14 }
 0x2c5   : > { %v989_v23 = vpack.c.bf16 %v1578_v11, %v1580_v9 }
 0x2c6   : > { %1583 = vpow2.f32 %v755_v27  ;;  %813 = vadd.xlane.f32.xlu2 %v1568_v15 }
 0x2c7   : > { %815 = vadd.xlane.f32.xlu1 %v1576_v62  ;;  %1025 = vmatmul.bf16.gmra.mxu2 %v989_v23  ;;  %v725_v35 = vpop.permute.xlu2 %724 }
 0x2c8   : > { %v742_v42 = vsub.f32 %v1918_v36, %v725_v35 }
 0x2ca   : > { %v773_v12 = vmul.f32 1.442695, %v742_v42  ;;  %v1582_v37 = vpop.eup %1581  ;;  %v775_v42 = vld [vmem:[#allocation3] sm:$0xff] }
 0x2cc   : > { %v1584_v28 = vpop.eup %1583  ;;  %1585 = vpow2.f32 %v773_v12 }
 0x2cd   : > { %v987_v30 = vpack.c.bf16 %v1582_v37, %v1584_v28  ;;  %1587 = vpow2.f32 %v767_v19  ;;  %v777_v19 = vld [vmem:[#allocation3 + $0x10] sm:$0xff] }
 0x2ce   : > { %817 = vadd.xlane.f32.xlu2 %v1574_v13 }
 0x2cf   : > { %v715_v50 = vpop.permute.xlu1 %714  ;;  %819 = vadd.xlane.f32.xlu1 %v1584_v28  ;;  %1015 = vmatmul.bf16.gmra.mxu1 %v987_v30  ;;  %v776_v30 = vld [vmem:[#allocation3 + $0x8] sm:$0xff] }
 0x2d0   : > { %v740_v43 = vsub.f32 %v1898_v26, %v715_v50  ;;  %v792_v50 = vmul.f32 %v2052_v40, %v776_v30 }
 0x2d2   : > { %v1586_v15 = vpop.eup %1585  ;;  %v769_v16 = vmul.f32 1.442695, %v740_v43 }
 0x2d3   : > { %837 = vadd.xlane.f32.xlu0 %v1586_v15  ;;  %v1588_v45 = vpop.eup %1587 }
 0x2d4   : > { %1589 = vpow2.f32 %v769_v16 }
 0x2d5   : > { %1591 = vpow2.f32 %v645_v54  ;;  %v876_v54 = vld [vmem:[#allocation4 + $0x20] sm:$0xff] }
 0x2d6   : > { %821 = vadd.xlane.f32.xlu2 %v1582_v37  ;;  %v791_v37 = vmul.f32 %v2066_v32, %v775_v42  ;;  %v936_v32 = vpop.permute.xlu0 %935  ;;  %v882_v42 = vld [vmem:[#allocation4 + $0x50] sm:$0xff] }
 0x2d7   : > { %v720_v36 = vpop.permute.xlu1 %719  ;;  %823 = vadd.xlane.f32.xlu1 %v1570_v55 }
 0x2d8   : > { %v741_v56 = vsub.f32 %v1906_v31, %v720_v36 }
 0x2da   : > { %v1590_v25 = vpop.eup %1589  ;;  %v771_v59 = vmul.f32 1.442695, %v741_v56  ;;  %v880_v56 = vld [vmem:[#allocation4 + $0x40] sm:$0xff] }
 0x2db   : > { %v990_v52 = vpack.c.bf16 %v1590_v25, %v1588_v45  ;;  %v2130_v26 = vpop.eup %1591 }
 0x2dc   : > { %1593 = vpow2.f32 %v771_v59 }
 0x2dd   : > { %1030 = vmatmul.bf16.gmra.mxu2 %v990_v52  ;;  %1595 = vpow2.f32 %v641_v39  ;;  %v779_v52 = vld [vmem:[#allocation3 + $0x20] sm:$0xff] }
 0x2de   : > { %825 = vadd.xlane.f32.xlu2 %v2115_v58  ;;  %1597 = vpow2.f32 %v643_v41  ;;  %v891_v58 = vpop.permute.xlu2 %890  ;;  %v795_v40 = vmul.f32 %v2068_v48, %v779_v52  ;;  %v877_v48 = vld [vmem:[#allocation4 + $0x28] sm:$0xff] }
 0x2df   : > { %827 = vadd.xlane.f32.xlu1 %v1580_v9  ;;  %v896_v34 = vpop.permute.xlu1 %895  ;;  %v968_v49 = vmul.f32 %v891_v58, %v872_v3 }
 0x2e0   : > { %v969_v8 = vmul.f32 %v896_v34, %v873_v7  ;;  %v2169_v7 = vpop.permute.xlu0 %950 }
 0x2e2   : > { %v1594_v55 = vpop.eup %1593 }
 0x2e3   : > { %v991_v31 = vpack.c.bf16 %v1586_v15, %v1594_v55  ;;  %v2139_v0 = vpop.eup %1595  ;;  %v793_v15 = vmul.f32 %v1936_v47, %v777_v19 }
 0x2e4   : > { %v2142_v22 = vpop.eup %1597 }
 0x2e6   : > { %829 = vadd.xlane.f32.xlu2 %v1578_v11  ;;  %v906_v38 = vpop.permute.xlu2 %905  ;;  %v875_v11 = vld [vmem:[#allocation4 + $0x18] sm:$0xff] }
 0x2e7   : > { %831 = vadd.xlane.f32.xlu1 %v1588_v45  ;;  %965 = vperm.xlu0 %1534, %v2130_v26   ;;  %v911_v21 = vpop.permute.xlu1 %910  ;;  %v971_v27 = vmul.f32 %v906_v38, %v875_v11 }
 0x2e8   : > { %v972_v41 = vmul.f32 %v911_v21, %v876_v54 }
 0x2ed   : > { %1035 = vmatmul.bf16.gmra.mxu2 %v991_v31 }
 0x2ee   : > { %833 = vadd.xlane.f32.xlu2 %v1590_v25  ;;  %v2148_v18 = vpop.permute.xlu2 %915  ;;  %v778_v25 = vld [vmem:[#allocation3 + $0x18] sm:$0xff] }
 0x2ef   : > { %835 = vadd.xlane.f32.xlu1 %v1594_v55  ;;  %v2145_v61 = vpop.permute.xlu1 %920  ;;  %v794_v59 = vmul.f32 %v2078_v46, %v778_v25  ;;  %v781_v46 = vld [vmem:[#allocation3 + $0x30] sm:$0xff] }
 0x2f6   : > { %v2151_v6 = vpop.permute.xlu2 %925 }
 0x2f7   : > { %v931_v17 = vpop.permute.xlu1 %930 }
 0x2f8   : > { %v976_v55 = vmul.f32 %v931_v17, %v880_v56  ;;  %v785_v56 = vld [vmem:[#allocation3 + $0x50] sm:$0xff] }
 0x2fe   : > { %v2157_v12 = vpop.permute.xlu2 %940 }
 0x2ff   : > { %v2154_v9 = vpop.permute.xlu1 %945  ;;  %v978_v30 = vmul.f32 %v2157_v12, %v882_v42  ;;  %v883_v12 = vld [vmem:[#allocation4 + $0x58] sm:$0xff] }
 0x306   : > { %955 = vperm.xlu2 %1532, %v2139_v0  }
 0x308   : > { %960 = vperm.xlu1 %1533, %v2142_v22  }
 0x30d   : > { %v1001_v57 = vpop.f32.mrf.mxu1 }
 0x30e   : > { %v1041_v4 = vadd.f32 %v1001_v57, %v968_v49  ;;  %v780_v57 = vld [vmem:[#allocation3 + $0x28] sm:$0xff] }
 0x30f   : > { %v796_v21 = vmul.f32 %v2090_v2, %v780_v57 }
 0x310   : > { %1057 = vst.msk [vmem:[#allocation4] sm:$0xff] %vm457_vm3, %v1041_v4  ;;  %v881_v4 = vld [vmem:[#allocation4 + $0x48] sm:$0xff] }
 0x315   : > { %v1003_v13 = vpop.f32.mrf.mxu1 }
 0x316   : > { %v1042_v62 = vadd.f32 %v1003_v13, %v969_v8  ;;  %v977_v8 = vmul.f32 %v936_v32, %v881_v4  ;;  %v784_v32 = vld [vmem:[#allocation3 + $0x48] sm:$0xff]  ;;  %v884_v4 = vld [vmem:[#allocation4 + $0x60] sm:$0xff] }
 0x317   : > { %v800_v52 = vmul.f32 %v1991_v10, %v784_v32  ;;  %v787_v10 = vld [vmem:[#allocation3 + $0x60] sm:$0xff] }
 0x318   : > { %1058 = vst.msk [vmem:[#allocation4 + $0x8] sm:$0xff] %vm457_vm3, %v1042_v62  ;;  %v797_v62 = vmul.f32 %v2080_v51, %v781_v46  ;;  %v788_v46 = vld [vmem:[#allocation3 + $0x68] sm:$0xff] }
 0x31d   : > { %v1006_v5 = vpop.f32.mrf.mxu1 }
 0x31e   : > { %v1043_v14 = vadd.f32 %v1006_v5, %v970_v53  ;;  %v790_v53 = vld [vmem:[#allocation3 + $0x78] sm:$0xff]  ;;  %v973_v5 = vmul.f32 %v2148_v18, %v877_v48  ;;  %v878_v18 = vld [vmem:[#allocation4 + $0x30] sm:$0xff] }
 0x31f   : > { %v806_v2 = vmul.f32 %v2130_v26, %v790_v53  ;;  %v789_v48 = vld [vmem:[#allocation3 + $0x70] sm:$0xff]  ;;  %v885_v53 = vld [vmem:[#allocation4 + $0x68] sm:$0xff] }
 0x320   : > { %1059 = vst.msk [vmem:[#allocation4 + $0x10] sm:$0xff] %vm457_vm3, %v1043_v14 }
 0x325   : > { %v1008_v23 = vpop.f32.mrf.mxu1 }
 0x326   : > { %v1044_v35 = vadd.f32 %v1008_v23, %v971_v27 }
 0x328   : > { %1060 = vst.msk [vmem:[#allocation4 + $0x18] sm:$0xff] %vm457_vm3, %v1044_v35  ;;  %v782_v35 = vld [vmem:[#allocation3 + $0x38] sm:$0xff] }
 0x32a   : > { %v808_v20 = vpop.xlane.xlu1 %807 }
 0x32b   : > { %v839_v28 = vadd.f32 %v808_v20, %v791_v37  ;;  %v783_v37 = vld [vmem:[#allocation3 + $0x40] sm:$0xff] }
 0x32d   : > { %856 = vst.msk [vmem:[#allocation3] sm:$0xff] %vm855_vm4, %v839_v28  ;;  %v798_v28 = vmul.f32 %v2097_v60, %v782_v35  ;;  %v886_v35 = vld [vmem:[#allocation4 + $0x70] sm:$0xff] }
 0x331   : > { %v810_v43 = vpop.xlane.xlu2 %809 }
 0x332   : > { %v840_v16 = vadd.f32 %v810_v43, %v792_v50  ;;  %v812_v36 = vpop.xlane.xlu1 %811  ;;  %v799_v50 = vmul.f32 %v2093_v29, %v783_v37  ;;  %v879_v29 = vld [vmem:[#allocation4 + $0x38] sm:$0xff] }
 0x333   : > { %v841_v45 = vadd.f32 %v812_v36, %v793_v15 }
 0x334   : > { %857 = vst.msk [vmem:[#allocation3 + $0x8] sm:$0xff] %vm855_vm4, %v840_v16  ;;  %v974_v16 = vmul.f32 %v2145_v61, %v878_v18  ;;  %v979_v61 = vmul.f32 %v2154_v9, %v883_v12 }
 0x335   : > { %858 = vst.msk [vmem:[#allocation3 + $0x10] sm:$0xff] %vm855_vm4, %v841_v45 }
 0x339   : > { %v814_v31 = vpop.xlane.xlu2 %813 }
 0x33a   : > { %v842_v34 = vadd.f32 %v814_v31, %v794_v59  ;;  %v816_v47 = vpop.xlane.xlu1 %815  ;;  %v1021_v39 = vpop.f32.mrf.mxu2  ;;  %v801_v59 = vmul.f32 %v2108_v33, %v785_v56 }
 0x33b   : > { %v843_v58 = vadd.f32 %v816_v47, %v795_v40  ;;  %v1049_v3 = vadd.f32 %v1021_v39, %v976_v55 }
 0x33c   : > { %859 = vst.msk [vmem:[#allocation3 + $0x18] sm:$0xff] %vm855_vm4, %v842_v34  ;;  %v1011_v38 = vpop.f32.mrf.mxu1  ;;  %v975_v34 = vmul.f32 %v2151_v6, %v879_v29 }
 0x33d   : > { %860 = vst.msk [vmem:[#allocation3 + $0x20] sm:$0xff] %vm855_vm4, %v843_v58  ;;  %v1045_v49 = vadd.f32 %v1011_v38, %v972_v41  ;;  %v803_v38 = vmul.f32 %v2023_v1, %v787_v10 }
 0x33e   : > { %1065 = vst.msk [vmem:[#allocation4 + $0x40] sm:$0xff] %vm457_vm3, %v1049_v3  ;;  %v786_v3 = vld [vmem:[#allocation3 + $0x58] sm:$0xff] }
 0x33f   : > { %1061 = vst.msk [vmem:[#allocation4 + $0x20] sm:$0xff] %vm457_vm3, %v1045_v49  ;;  %v802_v33 = vmul.f32 %v2102_v63, %v786_v3 }
 0x341   : > { %v818_v13 = vpop.xlane.xlu2 %817 }
 0x342   : > { %v844_v17 = vadd.f32 %v818_v13, %v796_v21  ;;  %v820_v44 = vpop.xlane.xlu1 %819  ;;  %v1023_v24 = vpop.f32.mrf.mxu2  ;;  %v980_v21 = vmul.f32 %v2169_v7, %v884_v4  ;;  %v804_v13 = vmul.f32 %v2139_v0, %v788_v46 }
 0x343   : > { %v845_v14 = vadd.f32 %v820_v44, %v797_v62  ;;  %v1050_v11 = vadd.f32 %v1023_v24, %v977_v8 }
 0x344   : > { %861 = vst.msk [vmem:[#allocation3 + $0x28] sm:$0xff] %vm855_vm4, %v844_v17  ;;  %v1013_v27 = vpop.f32.mrf.mxu1  ;;  %v805_v17 = vmul.f32 %v2142_v22, %v789_v48 }
 0x345   : > { %862 = vst.msk [vmem:[#allocation3 + $0x30] sm:$0xff] %vm855_vm4, %v845_v14  ;;  %v1046_v23 = vadd.f32 %v1013_v27, %v973_v5  ;;  %v887_v27 = vld [vmem:[#allocation4 + $0x78] sm:$0xff] }
 0x346   : > { %1066 = vst.msk [vmem:[#allocation4 + $0x48] sm:$0xff] %vm457_vm3, %v1050_v11  ;;  %v838_v51 = vpop.xlane.xlu0 %837 }
 0x347   : > { %1062 = vst.msk [vmem:[#allocation4 + $0x28] sm:$0xff] %vm457_vm3, %v1046_v23  ;;  %v854_v20 = vadd.f32 %v838_v51, %v806_v2 }
 0x349   : > { %871 = vst.msk [vmem:[#allocation3 + $0x78] sm:$0xff] %vm855_vm4, %v854_v20  ;;  %v822_v19 = vpop.xlane.xlu2 %821 }
 0x34a   : > { %v846_v26 = vadd.f32 %v822_v19, %v798_v28  ;;  %v824_v43 = vpop.xlane.xlu1 %823  ;;  %v1026_v15 = vpop.f32.mrf.mxu2 }
 0x34b   : > { %v847_v36 = vadd.f32 %v824_v43, %v799_v50  ;;  %v1051_v45 = vadd.f32 %v1026_v15, %v978_v30 }
 0x34c   : > { %863 = vst.msk [vmem:[#allocation3 + $0x38] sm:$0xff] %vm855_vm4, %v846_v26  ;;  %v1016_v25 = vpop.f32.mrf.mxu1 }
 0x34d   : > { %864 = vst.msk [vmem:[#allocation3 + $0x40] sm:$0xff] %vm855_vm4, %v847_v36  ;;  %v1047_v60 = vadd.f32 %v1016_v25, %v974_v16 }
 0x34e   : > { %1067 = vst.msk [vmem:[#allocation4 + $0x50] sm:$0xff] %vm457_vm3, %v1051_v45 }
 0x34f   : > { %1063 = vst.msk [vmem:[#allocation4 + $0x30] sm:$0xff] %vm457_vm3, %v1047_v60 }
 0x351   : > { %v826_v54 = vpop.xlane.xlu2 %825 }
 0x352   : > { %v848_v55 = vadd.f32 %v826_v54, %v800_v52  ;;  %v828_v31 = vpop.xlane.xlu1 %827  ;;  %v1028_v40 = vpop.f32.mrf.mxu2 }
 0x353   : > { %v849_v47 = vadd.f32 %v828_v31, %v801_v59  ;;  %v1052_v39 = vadd.f32 %v1028_v40, %v979_v61 }
 0x354   : > { %865 = vst.msk [vmem:[#allocation3 + $0x48] sm:$0xff] %vm855_vm4, %v848_v55  ;;  %v1018_v41 = vpop.f32.mrf.mxu1 }
 0x355   : > { %866 = vst.msk [vmem:[#allocation3 + $0x50] sm:$0xff] %vm855_vm4, %v849_v47  ;;  %v1048_v58 = vadd.f32 %v1018_v41, %v975_v34 }
 0x356   : > { %1068 = vst.msk [vmem:[#allocation4 + $0x58] sm:$0xff] %vm457_vm3, %v1052_v39 }
 0x357   : > { %1064 = vst.msk [vmem:[#allocation4 + $0x38] sm:$0xff] %vm457_vm3, %v1048_v58 }
 0x359   : > { %v830_v9 = vpop.xlane.xlu2 %829  ;;  %v966_v23 = vpop.permute.xlu0 %965 }
 0x35a   : > { %v850_v6 = vadd.f32 %v830_v9, %v802_v33  ;;  %v832_v49 = vpop.xlane.xlu1 %831  ;;  %v983_v22 = vmul.f32 %v966_v23, %v887_v27 }
 0x35b   : > { %v851_v57 = vadd.f32 %v832_v49, %v803_v38 }
 0x35c   : > { %867 = vst.msk [vmem:[#allocation3 + $0x58] sm:$0xff] %vm855_vm4, %v850_v6 }
 0x35d   : > { %868 = vst.msk [vmem:[#allocation3 + $0x60] sm:$0xff] %vm855_vm4, %v851_v57 }
 0x360   : > { %v1031_v8 = vpop.f32.mrf.mxu2 }
 0x361   : > { %v1053_v62 = vadd.f32 %v1031_v8, %v980_v21  ;;  %v834_v63 = vpop.xlane.xlu2 %833 }
 0x362   : > { %v852_v1 = vadd.f32 %v834_v63, %v804_v13  ;;  %v836_v44 = vpop.xlane.xlu1 %835 }
 0x363   : > { %1069 = vst.msk [vmem:[#allocation4 + $0x60] sm:$0xff] %vm457_vm3, %v1053_v62  ;;  %v853_v24 = vadd.f32 %v836_v44, %v805_v17 }
 0x364   : > { %869 = vst.msk [vmem:[#allocation3 + $0x68] sm:$0xff] %vm855_vm4, %v852_v1 }
 0x365   : > { %870 = vst.msk [vmem:[#allocation3 + $0x70] sm:$0xff] %vm855_vm4, %v853_v24 }
 0x368   : > { %v1033_v5 = vpop.f32.mrf.mxu2 }
 0x369   : > { %v956_v14 = vpop.permute.xlu2 %955 }
 0x36a   : > { %v981_v7 = vmul.f32 %v956_v14, %v885_v53 }
 0x36c   : > { %v1054_v11 = vadd.f32 %v1033_v5, %v981_v7 }
 0x36e   : > { %1070 = vst.msk [vmem:[#allocation4 + $0x68] sm:$0xff] %vm457_vm3, %v1054_v11 }
 0x370   : > { %v1036_v0 = vpop.f32.mrf.mxu2 }
 0x378   : > { %v1038_v2 = vpop.f32.mrf.mxu2 }
 0x379   : > { %v1056_v42 = vadd.f32 %v1038_v2, %v983_v22 }
 0x37a   : > { %v961_v51 = vpop.permute.xlu1 %960 }
 0x37b   : > { %1072 = vst.msk [vmem:[#allocation4 + $0x78] sm:$0xff] %vm457_vm3, %v1056_v42  ;;  %v982_v37 = vmul.f32 %v961_v51, %v886_v35  ;;  %1092 = sbr.rel (%p1466_p10) target bundleno = 1229 (0x4cd), region = 52 }
 0x37d   : > { %v1055_v20 = vadd.f32 %v1036_v0, %v982_v37 }
 0x37f   : > { %1071 = vst.msk [vmem:[#allocation4 + $0x70] sm:$0xff] %vm457_vm3, %v1055_v20 }
 0x380   : > { %v1123_v18 = vld [vmem:[#allocation3 + $0x70] sm:$0xff]  ;;  %v1121_v28 = vld [vmem:[#allocation3 + $0x60] sm:$0xff]  ;;  %v1693_v30 = vmov 0   ;;  %v1124_v50 = vld [vmem:[#allocation3 + $0x78] sm:$0xff] }
 0x381   : > { %1600 = vset.pattern.permute.xlu1 %v1693_v30  ;;  %1599 = vset.pattern.permute.xlu0 %v1693_v30  ;;  %1602 = vrcp.f32 %v1123_v18  ;;  %v1119_v19 = vld [vmem:[#allocation3 + $0x50] sm:$0xff]  ;;  %v1122_v26 = vld [vmem:[#allocation3 + $0x68] sm:$0xff]  ;;  %v1120_v16 = vld [vmem:[#allocation3 + $0x58] sm:$0xff] }
 0x382   : > { %1604 = vrcp.f32 %v1121_v28  ;;  %1601 = vset.pattern.permute.xlu2 %v1693_v30  ;;  %v1117_v45 = vld [vmem:[#allocation3 + $0x40] sm:$0xff]  ;;  %v1118_v60 = vld [vmem:[#allocation3 + $0x48] sm:$0xff]  ;;  %v1115_v12 = vld [vmem:[#allocation3 + $0x30] sm:$0xff] }
 0x383   : > { %1606 = vrcp.f32 %v1119_v19  ;;  %v1116_v29 = vld [vmem:[#allocation3 + $0x38] sm:$0xff]  ;;  %v1113_v61 = vld [vmem:[#allocation3 + $0x20] sm:$0xff]  ;;  %v1114_v59 = vld [vmem:[#allocation3 + $0x28] sm:$0xff] }
 0x384   : > { %1608 = vrcp.f32 %v1124_v50  ;;  %v1111_v31 = vld [vmem:[#allocation3 + $0x10] sm:$0xff]  ;;  %v1112_v34 = vld [vmem:[#allocation3 + $0x18] sm:$0xff]  ;;  %v1109_v39 = vld [vmem:[#allocation3] sm:$0xff] }
 0x385   : > { %1610 = vrcp.f32 %v1122_v26  ;;  %v1110_v58 = vld [vmem:[#allocation3 + $0x8] sm:$0xff]  ;;  %v1247_v38 = vld [vmem:[%s2255_s5] sm:$0xff]  ;;  %v1108_v4 = vld [vmem:[#allocation4 + $0x78] sm:$0xff] }
 0x386   : > { %1612 = vrcp.f32 %v1120_v16  ;;  %v1107_v57 = vld [vmem:[#allocation4 + $0x70] sm:$0xff]  ;;  %v1105_v13 = vld [vmem:[#allocation4 + $0x60] sm:$0xff]  ;;  %v1106_v63 = vld [vmem:[#allocation4 + $0x68] sm:$0xff] }
 0x387   : > { %v1603_v43 = vpop.eup %1602  ;;  %1614 = vrcp.f32 %v1117_v45  ;;  %v1103_v5 = vld [vmem:[#allocation4 + $0x50] sm:$0xff]  ;;  %v1104_v14 = vld [vmem:[#allocation4 + $0x58] sm:$0xff]  ;;  %v1102_v35 = vld [vmem:[#allocation4 + $0x48] sm:$0xff] }
 0x388   : > { %v1605_v15 = vpop.eup %1604  ;;  %1213 = vperm.xlu0 %1599, %v1603_v43   ;;  %1616 = vrcp.f32 %v1118_v60  ;;  %v1101_v42 = vld [vmem:[#allocation4 + $0x40] sm:$0xff]  ;;  %v1100_v30 = vld [vmem:[#allocation4 + $0x38] sm:$0xff]  ;;  %v1099_v50 = vld [vmem:[#allocation4 + $0x30] sm:$0xff] }
 0x389   : > { %1203 = vperm.xlu1 %1600, %v1605_v15   ;;  %v1607_v36 = vpop.eup %1606  ;;  %1618 = vrcp.f32 %v1115_v12  ;;  %v1097_v45 = vld [vmem:[#allocation4 + $0x20] sm:$0xff] }
 0x38a   : > { %1193 = vperm.xlu2 %1601, %v1607_v36   ;;  %v1609_v25 = vpop.eup %1608  ;;  %1620 = vrcp.f32 %v1116_v29 }
 0x38b   : > { %v1611_v32 = vpop.eup %1610  ;;  %1622 = vrcp.f32 %v1113_v61 }
 0x38c   : > { %v1613_v56 = vpop.eup %1612  ;;  %1624 = vrcp.f32 %v1114_v59  ;;  %v1095_v59 = vld [vmem:[#allocation4 + $0x10] sm:$0xff] }
 0x38d   : > { %v1615_v52 = vpop.eup %1614  ;;  %1626 = vrcp.f32 %v1111_v31 }
 0x38e   : > { %v1617_v54 = vpop.eup %1616  ;;  %1628 = vrcp.f32 %v1112_v34 }
 0x38f   : > { %v1619_v55 = vpop.eup %1618  ;;  %1630 = vrcp.f32 %v1109_v39  ;;  %v1094_v39 = vld [vmem:[#allocation4 + $0x8] sm:$0xff] }
 0x390   : > { %1218 = vperm.xlu0 %1599, %v1609_v25   ;;  %v1621_v40 = vpop.eup %1620  ;;  %1632 = vrcp.f32 %v1110_v58  ;;  %v1098_v25 = vld [vmem:[#allocation4 + $0x28] sm:$0xff]  ;;  %v1093_v58 = vld [vmem:[#allocation4] sm:$0xff] }
 0x391   : > { %1208 = vperm.xlu1 %1600, %v1611_v32   ;;  %v1623_v47 = vpop.eup %1622 }
 0x392   : > { %1198 = vperm.xlu2 %1601, %v1613_v56   ;;  %v1625_v41 = vpop.eup %1624 }
 0x393   : > { %v1627_v3 = vpop.eup %1626 }
 0x394   : > { %v1629_v10 = vpop.eup %1628 }
 0x395   : > { %v1631_v33 = vpop.eup %1630 }
 0x396   : > { %v1633_v9 = vpop.eup %1632 }
 0x398   : > { %1183 = vperm.xlu0 %1599, %v1615_v52  }
 0x399   : > { %1188 = vperm.xlu1 %1600, %v1617_v54   ;;  %v1096_v54 = vld [vmem:[#allocation4 + $0x18] sm:$0xff] }
 0x39a   : > { %1173 = vperm.xlu2 %1601, %v1619_v55  }
 0x3a0   : > { %1178 = vperm.xlu0 %1599, %v1621_v40  }
 0x3a1   : > { %1163 = vperm.xlu1 %1600, %v1623_v47  }
 0x3a2   : > { %1168 = vperm.xlu2 %1601, %v1625_v41  }
 0x3a8   : > { %1153 = vperm.xlu0 %1599, %v1627_v3  }
 0x3a9   : > { %1158 = vperm.xlu1 %1600, %v1629_v10  }
 0x3aa   : > { %1143 = vperm.xlu2 %1601, %v1631_v33  }
 0x3b0   : > { %1148 = vperm.xlu0 %1599, %v1633_v9  }
 0x3b1   : > { %1250 = vperm.xlu1 %1600, %v1247_v38  }
 0x3e4   : > { %v1194_v8 = vpop.permute.xlu2 %1193 }
 0x3e5   : > { %v1231_v11 = vmul.f32 %v1194_v8, %v1103_v5 }
 0x3ec   : > { %v1199_v7 = vpop.permute.xlu2 %1198 }
 0x3ed   : > { %v1232_v0 = vmul.f32 %v1199_v7, %v1104_v14 }
 0x3ef   : > { %v1244_v22 = vpack.c.bf16 %v1232_v0, %v1231_v11 }
 0x3f1   : > { %v1272_v20 = vsel %vm457_vm3, %v1244_v22, 0 }
 0x3f4   : > { %v1174_v19 = vpop.permute.xlu2 %1173 }
 0x3f5   : > { %v1227_v15 = vmul.f32 %v1174_v19, %v1099_v50 }
 0x3fa   : > { %v1214_v6 = vpop.permute.xlu0 %1213 }
 0x3fb   : > { %v1204_v49 = vpop.permute.xlu1 %1203  ;;  %v1235_v48 = vmul.f32 %v1214_v6, %v1107_v57  ;;  %v1237_v6 = vld [vmem:[%s2254_s4] sm:$0xff] }
 0x3fc   : > { %v1233_v1 = vmul.f32 %v1204_v49, %v1105_v13  ;;  %v1169_v12 = vpop.permute.xlu2 %1168  ;;  %v1238_v49 = vpack.c.bf16 %v1237_v6, %v1237_v6 }
 0x3fd   : > { %v1226_v56 = vmul.f32 %v1169_v12, %v1098_v25 }
 0x402   : > { %v1219_v46 = vpop.permute.xlu0 %1218 }
 0x403   : > { %v1236_v21 = vmul.f32 %v1219_v46, %v1108_v4  ;;  %v1209_v62 = vpop.permute.xlu1 %1208  ;;  %v1293_v46 = vld [vmem:[%s1782_s16] sm:$0xff] }
 0x404   : > { %v1234_v44 = vmul.f32 %v1209_v62, %v1106_v63  ;;  %v1144_v41 = vpop.permute.xlu2 %1143 }
 0x405   : > { %v1246_v17 = vpack.c.bf16 %v1236_v21, %v1235_v48  ;;  %v1221_v33 = vmul.f32 %v1144_v41, %v1093_v58 }
 0x406   : > { %v1245_v53 = vpack.c.bf16 %v1234_v44, %v1233_v1 }
 0x407   : > { %v1278_v24 = vsel %vm457_vm3, %v1246_v17, 0 }
 0x408   : > { %1280 = vmatpush.bf16.xpose.msra.mxu0 %v1278_v24  ;;  %v1275_v27 = vsel %vm457_vm3, %v1245_v53, 0 }
 0x40a   : > { %v1184_v23 = vpop.permute.xlu0 %1183 }
 0x40b   : > { %v1189_v2 = vpop.permute.xlu1 %1188  ;;  %v1229_v37 = vmul.f32 %v1184_v23, %v1101_v42 }
 0x40c   : > { %v1230_v51 = vmul.f32 %v1189_v2, %v1102_v35 }
 0x40e   : > { %v1243_v18 = vpack.c.bf16 %v1230_v51, %v1229_v37 }
 0x410   : > { %1281 = vmatpush.bf16.xpose.msra.mxu0 %v1275_v27  ;;  %v1269_v43 = vsel %vm457_vm3, %v1243_v18, 0 }
 0x412   : > { %v1179_v28 = vpop.permute.xlu0 %1178 }
 0x413   : > { %v1228_v26 = vmul.f32 %v1179_v28, %v1100_v30  ;;  %v1164_v16 = vpop.permute.xlu1 %1163 }
 0x414   : > { %v1225_v60 = vmul.f32 %v1164_v16, %v1097_v45 }
 0x415   : > { %v1242_v36 = vpack.c.bf16 %v1228_v26, %v1227_v15 }
 0x416   : > { %v1241_v52 = vpack.c.bf16 %v1226_v56, %v1225_v60 }
 0x417   : > { %v1266_v32 = vsel %vm457_vm3, %v1242_v36, 0 }
 0x418   : > { %1282 = vmatpush.bf16.xpose.msra.mxu0 %v1272_v20  ;;  %v1263_v40 = vsel %vm457_vm3, %v1241_v52, 0 }
 0x41a   : > { %v1154_v29 = vpop.permute.xlu0 %1153 }
 0x41b   : > { %v1159_v61 = vpop.permute.xlu1 %1158  ;;  %v1223_v31 = vmul.f32 %v1154_v29, %v1095_v59 }
 0x41c   : > { %v1224_v55 = vmul.f32 %v1159_v61, %v1096_v54 }
 0x41e   : > { %v1240_v34 = vpack.c.bf16 %v1224_v55, %v1223_v31 }
 0x420   : > { %1283 = vmatpush.bf16.xpose.msra.mxu0 %v1269_v43  ;;  %v1260_v10 = vsel %vm457_vm3, %v1240_v34, 0 }
 0x422   : > { %v1149_v47 = vpop.permute.xlu0 %1148 }
 0x423   : > { %v1222_v3 = vmul.f32 %v1149_v47, %v1094_v39  ;;  %v1251_v57 = vpop.permute.xlu1 %1250 }
 0x425   : > { %v1239_v9 = vpack.c.bf16 %v1222_v3, %v1221_v33 }
 0x427   : > { %v1257_v38 = vsel %vm457_vm3, %v1239_v9, 0 }
 0x428   : > { %1284 = vmatpush.bf16.xpose.msra.mxu0 %v1266_v32 }
 0x430   : > { %1285 = vmatpush.bf16.xpose.msra.mxu0 %v1263_v40 }
 0x438   : > { %1286 = vmatpush.bf16.xpose.msra.mxu0 %v1260_v10 }
 0x440   : > { %1287 = vmatpush.bf16.xpose.msra.mxu0 %v1257_v38 }
 0x447   : > { %1467 = vmatmul.msk.bf16.vlgmr.msra.gmra.mxu0 %vm457_vm3, %v1238_v49 }
 0x4c4   : > { %v1289_v4 = vpop.f32.mrf.mxu0 }
 0x4c5   : > { %v1290_v48 = vadd.f32 %v1289_v4, %v1251_v57 }
 0x4c7   : > { %v1294_v21 = vadd.f32 %v1293_v46, %v1290_v48 }
 0x4c9   : > { %1295 = vst [vmem:[%s1788_s20] sm:$0xff] %v1294_v21 }
 0x4cc   : > { %v1291_v8 = vpop.f32.mrf.mxu0 }
 0x4cd PF: > { %s16_s27 = sadd.s32 1, %s1688_s27   ;;  %s2259_s10 = sld [smem:[#allocation5_spill]] }
 0x4ce   : > { %p13_p11 = scmp.ge.s32.totalorder %s16_s27, 10   ;;  %s2260_s13 = sld [smem:[#allocation6_spill]] }
 0x4cf   : > { %s2261_s21 = smov %s1676_s24  ;;  %s2262_s22 = smov %s1680_s25 }
 0x4d0   : > { %s2263_s23 = smov %s1684_s26  ;;  %s2264_s24 = smov %s2268_s28 }
 0x4d1   :  { %15 = sbr.rel (!%p13_p11) target bundleno = 4 (0x4), region = 91 }
 0x4d3   : > { %s2265_s25 = smov %s2259_s10 }
 0x4d4   : > { %s2266_s26 = smov %s2260_s13 }

</bundles_post_ra>
